<compile_context>
chip_gen: v5e
topology: v5e:2x2
jax: 0.10.0
libtpu: 0.0.40
codegen_flags: <defaults>
</compile_context>

<pallas_src>
import functools

import jax
import jax.numpy as jnp
from jax import lax
from jax.experimental import pallas as pl
from jax.experimental.pallas import tpu as pltpu

DW = 4     # config.downscale_factor (small synthetic choice)
FC = 9     # conv output channels
KK = 5     # conv kernel size
CIN = 3    # conv input channels
LANE = 128


def _round_up(x, m):
    return (x + m - 1) // m * m


def _pick_chunk_cols(W):
    """Horizontal chunk width cw (output pixels per chunk)."""
    if (W + 4) * CIN <= LANE:            # whole padded row fits one 128-lane slot
        return W
    for cand in (32, 16, 8):             # prefer cw*dw a multiple of 128 (dw=4)
        if W % cand == 0:
            return cand
    for cand in range(38, 0, -1):        # fallback: keep (cw+4)*3 <= 128
        if W % cand == 0:
            return cand
    return 1


def _pick_band_rows(H):
    """Row-band height th (matmul M dim).  One band when H <= 128."""
    if H <= 128:
        return H
    best = None
    for cand in range(8, 129, 8):
        if H % cand == 0:
            best = cand
    if best is not None:
        return best
    for cand in range(128, 0, -1):
        if H % cand == 0:
            return cand
    return H


def prepare_decode(conv_w, conv_b, deconv_w, deconv_b, W, *,
                   dw=DW, compute_dtype=jnp.bfloat16):
    """Fuse conv+deconv weights into banded (block-Toeplitz) MXU operands.

    Built ONCE per weight set (not per forward call).  Returns:
      bmat: (KK, kcp, cw*dw*dw) bf16  banded fused weights, dw folded into N
      bias: (1, cw*dw*dw)       f32   fused bias in (i, w, j) column order
    plus static tiling parameters.
    """
    cw = _pick_chunk_cols(W)
    kc = (cw + 4) * CIN
    kcp = _round_up(kc, LANE)
    nout = cw * dw * dw

    # W_eff[dy, dx, c, i, j] = sum_f conv_w[f, c, dy, dx] * deconv_w[f, 0, i, j]
    w_eff = jnp.einsum('fcyx,fij->yxcij', conv_w, deconv_w[:, 0])
    b_eff = jnp.einsum('f,fij->ij', conv_b, deconv_w[:, 0]) + deconv_b[0]

    # banded RHS:
    #   bmat[dy, wp*CIN + c, i*cw*dw + w*dw + j] = W_eff[dy, wp - w, c, i, j]
    bfull = jnp.zeros((KK, cw + 4, CIN, dw, cw, dw), jnp.float32)
    wo = jnp.arange(cw)
    for dx in range(KK):
        src = jnp.broadcast_to(w_eff[:, dx][None], (cw, KK, CIN, dw, dw))
        bfull = bfull.at[:, wo + dx, :, :, wo, :].set(src)
    bmat = bfull.reshape(KK, kc, nout)
    bmat = jnp.pad(bmat, ((0, 0), (0, kcp - kc), (0, 0))).astype(compute_dtype)

    bias = jnp.broadcast_to(b_eff[:, None, :], (dw, cw, dw))
    bias = bias.reshape(1, nout).astype(jnp.float32)

    return dict(bmat=bmat, bias=bias, cw=cw, kcp=kcp, dw=dw)


def _decode_kernel(x_ref, w_ref, b_ref, o_ref, *, th, cw, W, dw, kcp, nchunks):
    """One grid step = one (image, row-band) output slab.

    x_ref: (th+4, nchunks*kcp)  bf16  padded channel-minor rows, 128-lane slots
    w_ref: (KK, kcp, cw*dw*dw)  bf16  banded fused weights (dw folded into N)
    b_ref: (1, cw*dw*dw)        f32   fused bias (chunk column order)
    o_ref: (th, dw*W*dw)              sub-pixel-interleaved output rows
    """
    bias = b_ref[...]                       # hoisted: one load / broadcast
    nout = cw * dw * dw
    cwdw = cw * dw
    # TODO(synk): optionally fold the kk=5 vertical taps into the contraction
    # dim on v5e/v6e (one dot per chunk) at the cost of an in-kernel lane concat.
    for ch in range(nchunks):               # unrolled; nchunks is small
        lane0 = ch * kcp                    # multiple of 128 -> aligned loads
        acc = jnp.zeros((th, nout), jnp.float32)
        for dy in range(KK):                # vertical taps, f32 MXU accumulation
            acc += jnp.dot(x_ref[dy:dy + th, lane0:lane0 + kcp], w_ref[dy],
                           preferred_element_type=jnp.float32)
        acc += bias
        if nchunks == 1:
            o_ref[...] = acc.astype(o_ref.dtype)          # one lane-dense store
        else:
            for i in range(dw):             # dw 128-aligned slices (cw % 32 == 0)
                c0 = i * W * dw + ch * cwdw
                o_ref[:, c0:c0 + cwdw] = (
                    acc[:, i * cwdw:(i + 1) * cwdw].astype(o_ref.dtype))


@functools.partial(jax.jit, static_argnames=("cw", "kcp", "dw", "out_dtype"))
def decode_forward(x_nchw, bmat, bias, *, cw, kcp, dw=DW, out_dtype=jnp.float32):
    N, Cin, H, W = x_nchw.shape
    assert Cin == CIN
    assert W % cw == 0
    nchunks = W // cw
    th = _pick_band_rows(H)
    nbands = H // th
    assert H % th == 0
    kc = (cw + 4) * CIN
    cdt = bmat.dtype

    # ---- activations: pad + channel-minor + 128-lane chunk slots + row bands
    xp = jnp.pad(x_nchw, ((0, 0), (0, 0), (2, 2), (2, 2)))
    xr = jnp.transpose(xp, (0, 2, 3, 1)).reshape(N, H + 4, (W + 4) * CIN)
    cols = []
    for ch in range(nchunks):
        sl = xr[:, :, ch * cw * CIN: ch * cw * CIN + kc]
        cols.append(jnp.pad(sl, ((0, 0), (0, 0), (0, kcp - kc))))
    xc = jnp.concatenate(cols, axis=-1) if nchunks > 1 else cols[0]
    # per-band row windows (th+4 rows) keep the x VMEM block small (v7x budget)
    bands = [xc[:, b * th: b * th + th + 4] for b in range(nbands)]
    xb = jnp.stack(bands, axis=1) if nbands > 1 else bands[0][:, None]
    xb = xb.astype(cdt)

    L = nchunks * kcp
    nout_chunk = cw * dw * dw
    nout_full = dw * W * dw

    kernel = functools.partial(_decode_kernel, th=th, cw=cw, W=W, dw=dw,
                               kcp=kcp, nchunks=nchunks)
    out = pl.pallas_call(
        kernel,
        out_shape=jax.ShapeDtypeStruct((N, H, nout_full), out_dtype),
        grid_spec=pltpu.PrefetchScalarGridSpec(
            num_scalar_prefetch=0,
            grid=(N, nbands),
            in_specs=[
                pl.BlockSpec((None, None, th + 4, L), lambda n, b: (n, b, 0, 0)),
                pl.BlockSpec((KK, kcp, nout_chunk), lambda n, b: (0, 0, 0)),
                pl.BlockSpec((1, nout_chunk), lambda n, b: (0, 0)),
            ],
            out_specs=pl.BlockSpec((None, th, nout_full), lambda n, b: (n, b, 0)),
        ),
        compiler_params=pltpu.CompilerParams(
            dimension_semantics=("parallel", "parallel")),
    )(xb, bmat, bias)

    # output is already (i, w, j) sub-pixel interleaved -> free reshape to NCHW
    return out.reshape(N, 1, H * dw, W * dw)


def decode_reference(x, conv_w, conv_b, deconv_w, deconv_b):
    # independent f32 JAX reference (lax conv + explicit sub-pixel scatter)
    y = lax.conv_general_dilated(
        x, conv_w, window_strides=(1, 1), padding=((2, 2), (2, 2)),
        dimension_numbers=("NCHW", "OIHW", "NCHW"))
    y = y + conv_b.reshape(1, FC, 1, 1)
    N, _, H, W = y.shape
    z = jnp.einsum("nchw,cij->nhiwj", y, deconv_w[:, 0])
    z = z.reshape(N, 1, H * DW, W * DW) + deconv_b.reshape(1, 1, 1, 1)
    return z


if __name__ == "__main__":
    key = jax.random.PRNGKey(0)
    k1, k2, k3, k4, k5 = jax.random.split(key, 5)

    conv_w = jax.random.normal(k1, (FC, CIN, KK, KK), jnp.float32) * 0.1
    conv_b = jax.random.normal(k2, (FC,), jnp.float32) * 0.1
    deconv_w = jax.random.normal(k3, (FC, 1, DW, DW), jnp.float32) * 0.1
    deconv_b = jax.random.normal(k4, (1,), jnp.float32) * 0.1

    N, H, W = 2, 32, 32          # W multiple of 32 -> fully lane-aligned path
    x = jax.random.normal(k5, (N, CIN, H, W), jnp.float32)

    params = prepare_decode(conv_w, conv_b, deconv_w, deconv_b, W)  # once per weight set
    out = decode_forward(x, params["bmat"], params["bias"],
                         cw=params["cw"], kcp=params["kcp"], dw=params["dw"])
    out = jax.block_until_ready(out)
    assert out.shape == (N, 1, H * DW, W * DW), out.shape

    ref = jax.block_until_ready(
        decode_reference(x, conv_w, conv_b, deconv_w, deconv_b))
    err = float(jnp.max(jnp.abs(out - ref)))
    # bf16 activations/weights with f32 MXU accumulation vs. an f32 reference.
    assert jnp.allclose(out, ref, rtol=1e-2, atol=1e-2), err

    print("KERNEL_OK")
</pallas_src>

<mosaic_0001>
module attributes {stable_mosaic.version = 11 : i64} {
  func.func @_decode_kernel(%arg0: i32, %arg1: i32, %arg2: memref<1x1x36x128xbf16, #tpu.memory_space<vmem>>, %arg3: memref<5x128x512xbf16, #tpu.memory_space<vmem>>, %arg4: memref<1x512xf32, #tpu.memory_space<vmem>>, %arg5: memref<1x32x512xf32, #tpu.memory_space<vmem>>) attributes {dimension_semantics = [#tpu.dimension_semantics<parallel>, #tpu.dimension_semantics<parallel>], iteration_bounds = array<i64: 2, 1>, scalar_prefetch = 0 : i64, scratch_operands = 0 : i64, tpu.core_type = #tpu.core_type<tc>, window_params = [{transform_indices = @transform_0, window_bounds = array<i64: 1, 1, 36, 128>}, {pipeline_mode = #tpu.pipeline_mode<synchronous>, transform_indices = @transform_1, window_bounds = array<i64: 5, 128, 512>}, {pipeline_mode = #tpu.pipeline_mode<synchronous>, transform_indices = @transform_2, window_bounds = array<i64: 1, 512>}, {transform_indices = @transform_3, window_bounds = array<i64: 1, 32, 512>}]} {
    %c0 = arith.constant 0 : index
    %c0_0 = arith.constant 0 : index
    %0 = vector.load %arg4[%c0, %c0_0] : memref<1x512xf32, #tpu.memory_space<vmem>>, vector<1x512xf32>
    %cst = arith.constant 0.000000e+00 : f32
    %1 = vector.broadcast %cst : f32 to vector<32x512xf32>
    %c0_1 = arith.constant 0 : index
    %c0_2 = arith.constant 0 : index
    %c0_3 = arith.constant 0 : index
    %c0_4 = arith.constant 0 : index
    %2 = vector.load %arg2[%c0_1, %c0_2, %c0_3, %c0_4] : memref<1x1x36x128xbf16, #tpu.memory_space<vmem>>, vector<1x1x32x128xbf16>
    %3 = vector.shape_cast %2 : vector<1x1x32x128xbf16> to vector<32x128xbf16>
    %c0_5 = arith.constant 0 : index
    %c0_6 = arith.constant 0 : index
    %c0_7 = arith.constant 0 : index
    %4 = vector.load %arg3[%c0_5, %c0_6, %c0_7] : memref<5x128x512xbf16, #tpu.memory_space<vmem>>, vector<1x128x512xbf16>
    %5 = vector.shape_cast %4 : vector<1x128x512xbf16> to vector<128x512xbf16>
    %cst_8 = arith.constant dense<0.000000e+00> : vector<32x512xf32>
    %6 = tpu.matmul %3, %5, %cst_8 {dimension_numbers = #tpu.dot_dimension_numbers<[1], [0], [0], [1], [0, 0, 1, 1], [], []>} : vector<32x128xbf16>, vector<128x512xbf16>, vector<32x512xf32> -> vector<32x512xf32>
    %7 = arith.addf %1, %6 : vector<32x512xf32>
    %c0_9 = arith.constant 0 : index
    %c0_10 = arith.constant 0 : index
    %c1 = arith.constant 1 : index
    %c0_11 = arith.constant 0 : index
    %8 = vector.load %arg2[%c0_9, %c0_10, %c1, %c0_11] : memref<1x1x36x128xbf16, #tpu.memory_space<vmem>>, vector<1x1x32x128xbf16>
    %9 = vector.shape_cast %8 : vector<1x1x32x128xbf16> to vector<32x128xbf16>
    %c1_12 = arith.constant 1 : index
    %c0_13 = arith.constant 0 : index
    %c0_14 = arith.constant 0 : index
    %10 = vector.load %arg3[%c1_12, %c0_13, %c0_14] : memref<5x128x512xbf16, #tpu.memory_space<vmem>>, vector<1x128x512xbf16>
    %11 = vector.shape_cast %10 : vector<1x128x512xbf16> to vector<128x512xbf16>
    %cst_15 = arith.constant dense<0.000000e+00> : vector<32x512xf32>
    %12 = tpu.matmul %9, %11, %cst_15 {dimension_numbers = #tpu.dot_dimension_numbers<[1], [0], [0], [1], [0, 0, 1, 1], [], []>} : vector<32x128xbf16>, vector<128x512xbf16>, vector<32x512xf32> -> vector<32x512xf32>
    %13 = arith.addf %7, %12 : vector<32x512xf32>
    %c0_16 = arith.constant 0 : index
    %c0_17 = arith.constant 0 : index
    %c2 = arith.constant 2 : index
    %c0_18 = arith.constant 0 : index
    %14 = vector.load %arg2[%c0_16, %c0_17, %c2, %c0_18] : memref<1x1x36x128xbf16, #tpu.memory_space<vmem>>, vector<1x1x32x128xbf16>
    %15 = vector.shape_cast %14 : vector<1x1x32x128xbf16> to vector<32x128xbf16>
    %c2_19 = arith.constant 2 : index
    %c0_20 = arith.constant 0 : index
    %c0_21 = arith.constant 0 : index
    %16 = vector.load %arg3[%c2_19, %c0_20, %c0_21] : memref<5x128x512xbf16, #tpu.memory_space<vmem>>, vector<1x128x512xbf16>
    %17 = vector.shape_cast %16 : vector<1x128x512xbf16> to vector<128x512xbf16>
    %cst_22 = arith.constant dense<0.000000e+00> : vector<32x512xf32>
    %18 = tpu.matmul %15, %17, %cst_22 {dimension_numbers = #tpu.dot_dimension_numbers<[1], [0], [0], [1], [0, 0, 1, 1], [], []>} : vector<32x128xbf16>, vector<128x512xbf16>, vector<32x512xf32> -> vector<32x512xf32>
    %19 = arith.addf %13, %18 : vector<32x512xf32>
    %c0_23 = arith.constant 0 : index
    %c0_24 = arith.constant 0 : index
    %c3 = arith.constant 3 : index
    %c0_25 = arith.constant 0 : index
    %20 = vector.load %arg2[%c0_23, %c0_24, %c3, %c0_25] : memref<1x1x36x128xbf16, #tpu.memory_space<vmem>>, vector<1x1x32x128xbf16>
    %21 = vector.shape_cast %20 : vector<1x1x32x128xbf16> to vector<32x128xbf16>
    %c3_26 = arith.constant 3 : index
    %c0_27 = arith.constant 0 : index
    %c0_28 = arith.constant 0 : index
    %22 = vector.load %arg3[%c3_26, %c0_27, %c0_28] : memref<5x128x512xbf16, #tpu.memory_space<vmem>>, vector<1x128x512xbf16>
    %23 = vector.shape_cast %22 : vector<1x128x512xbf16> to vector<128x512xbf16>
    %cst_29 = arith.constant dense<0.000000e+00> : vector<32x512xf32>
    %24 = tpu.matmul %21, %23, %cst_29 {dimension_numbers = #tpu.dot_dimension_numbers<[1], [0], [0], [1], [0, 0, 1, 1], [], []>} : vector<32x128xbf16>, vector<128x512xbf16>, vector<32x512xf32> -> vector<32x512xf32>
    %25 = arith.addf %19, %24 : vector<32x512xf32>
    %c0_30 = arith.constant 0 : index
    %c0_31 = arith.constant 0 : index
    %c4 = arith.constant 4 : index
    %c0_32 = arith.constant 0 : index
    %26 = vector.load %arg2[%c0_30, %c0_31, %c4, %c0_32] : memref<1x1x36x128xbf16, #tpu.memory_space<vmem>>, vector<1x1x32x128xbf16>
    %27 = vector.shape_cast %26 : vector<1x1x32x128xbf16> to vector<32x128xbf16>
    %c4_33 = arith.constant 4 : index
    %c0_34 = arith.constant 0 : index
    %c0_35 = arith.constant 0 : index
    %28 = vector.load %arg3[%c4_33, %c0_34, %c0_35] : memref<5x128x512xbf16, #tpu.memory_space<vmem>>, vector<1x128x512xbf16>
    %29 = vector.shape_cast %28 : vector<1x128x512xbf16> to vector<128x512xbf16>
    %cst_36 = arith.constant dense<0.000000e+00> : vector<32x512xf32>
    %30 = tpu.matmul %27, %29, %cst_36 {dimension_numbers = #tpu.dot_dimension_numbers<[1], [0], [0], [1], [0, 0, 1, 1], [], []>} : vector<32x128xbf16>, vector<128x512xbf16>, vector<32x512xf32> -> vector<32x512xf32>
    %31 = arith.addf %25, %30 : vector<32x512xf32>
    %32 = vector.broadcast %0 : vector<1x512xf32> to vector<32x512xf32>
    %33 = arith.addf %31, %32 : vector<32x512xf32>
    %c0_37 = arith.constant 0 : index
    %c0_38 = arith.constant 0 : index
    %c0_39 = arith.constant 0 : index
    %34 = vector.load %arg5[%c0_37, %c0_38, %c0_39] : memref<1x32x512xf32, #tpu.memory_space<vmem>>, vector<1x32x512xf32>
    %35 = vector.shape_cast %34 : vector<1x32x512xf32> to vector<32x512xf32>
    %36 = vector.shape_cast %33 : vector<32x512xf32> to vector<1x32x512xf32>
    tpu.vector_store %arg5[%c0_37, %c0_38, %c0_39], %36 {strides = array<i32>} : memref<1x32x512xf32, #tpu.memory_space<vmem>>, vector<1x32x512xf32>,
    return
  }
  func.func @transform_0(%arg0: i32, %arg1: i32) -> (i32, i32, i32, i32) {
    %c0_i32 = arith.constant 0 : i32
    %c0_i32_0 = arith.constant 0 : i32
    %c0_i32_1 = arith.constant 0 : i32
    return %arg0, %arg1, %c0_i32, %c0_i32_0 : i32, i32, i32, i32
  }
  func.func @transform_1(%arg0: i32, %arg1: i32) -> (i32, i32, i32) {
    %c0_i32 = arith.constant 0 : i32
    %c0_i32_0 = arith.constant 0 : i32
    %c0_i32_1 = arith.constant 0 : i32
    %c0_i32_2 = arith.constant 0 : i32
    return %c0_i32, %c0_i32_0, %c0_i32_1 : i32, i32, i32
  }
  func.func @transform_2(%arg0: i32, %arg1: i32) -> (i32, i32) {
    %c0_i32 = arith.constant 0 : i32
    %c0_i32_0 = arith.constant 0 : i32
    %c0_i32_1 = arith.constant 0 : i32
    return %c0_i32, %c0_i32_0 : i32, i32
  }
  func.func @transform_3(%arg0: i32, %arg1: i32) -> (i32, i32, i32) {
    %c0_i32 = arith.constant 0 : i32
    %c0_i32_0 = arith.constant 0 : i32
    return %arg0, %arg1, %c0_i32 : i32, i32, i32
  }
}

</mosaic_0001>

<bundles_post_ra>
// kernel: decode_forward.1
= control target key start
LH: loop header
LB: loop body
LE: loop exit
PB: predicated region body
PF: predicated region fallthrough
CT: control target
= control target key end

     0   :  { %8 = vsyncpa [#allocation3], 0  ;;  %s2806_s12 = smov 0   ;;  %s2808_s13 = smov 0   ;;  %s3061_s0 = inlined_call_operand.vmem [shape: bf16[2,1,36,128], index: 0, kind: input, shape index: {}]   ;;  %s3062_s1 = inlined_call_operand.hbm [shape: bf16[5,128,512], index: 1, kind: input, shape index: {}]   ;;  %s3063_s2 = inlined_call_operand.vmem [shape: f32[1,512], index: 2, kind: input, shape index: {}]   ;;  %s3064_s3 = inlined_call_operand.vmem [shape: f32[2,32,512], index: 3, kind: output, shape index: {}]  }
   0x1   :  { %s2810_s14 = smov 0  }
   0x2 LB: > { %s1864_s15 = sadd.s32 4294967295, %s2781_s14   ;;  %s26_s16 = sadd.s32 1, %s2777_s13  ;;  %s2781_s14 = sphi %s2810_s14, %s14_s14   ;;  %s2777_s13 = sphi %s2808_s13, %s3066_s13   ;;  %s2773_s12 = sphi %s2806_s12, %s3065_s12  }
   0x3   : > { %p28_p0 = scmp.ge.s32.totalorder %s26_s16, 2  ;;  %p1866_p1 = scmp.ge.s32.totalorder %s2781_s14, 1 }
   0x4   : > { %p129_p2 = scmp.lt.s32.totalorder %s2781_s14, 3  ;;  %p2695_p4 = scmp.eq.s32.totalorder %s1864_s15, 0 }
   0x5   : > { %s3068_s16 = smov (%p28_p0, %s26_s16), 0  ;;  %s140_s19 = sshll.u32 %s3062_s1, 4  ;;  %s141_s19 = int_to_ptr.hbm [resolvable:$true] %s140_s19 }
   0x6   : > { %p130_p3 = pnand %p1866_p1, %p129_p2  ;;  %s2783_s20 = smov [#allocation2]  }
   0x7   : > { %s142_s21 = sshll.u32 %s2783_s20, 4  ;;  %s2784_s22 = smov 256   ;;  %s143_s21 = int_to_ptr.vmem [resolvable:$true] %s142_s21 }
   0x8   : > { %p2691_p5 = pneg %p130_p3  ;;  %s2785_s23 = smov 16  }
   0x9   : > { %173 = sbr.rel (%p130_p3) target bundleno = 343 (0x157), region = 32 }
   0xa   : > { %p2692_p6 = pnand %p2695_p4, %p2691_p5 }
   0xc   : > { %2694 = dma.hbm_to_vmem [thread:$0]  (!%p2692_p6), %s141_s19, 20480, %s143_s21, [#allocation3], %s2784_s22, %s2784_s22, %s2785_s23  }
   0xe   : > { %2768 = dma.done.wait (%p2695_p4), [#allocation3], 20480  }
   0xf   : > { %2770 = vsyncadd (%p2695_p4), [#allocation3], 4294946816  ;;  %p207_p7 = scmp.lt.s32.totalorder %s2773_s12, 1  ;;  %v1992_v0 = vld [vmem:[#allocation2 + $0x1e0] sm:$0xf]  ;;  %vm845_vm1 = vcmask 1046528  }
  0x10   : > { %v2584_v1 = vld [vmem:[#allocation2 + $0x1ec] sm:$0xf0]  ;;  %v2582_v2 = vld [vmem:[#allocation2 + $0x1e4] sm:$0xf]  ;;  %v1994_v4 = vld [vmem:[#allocation2 + $0x1f0] sm:$0xf0] }
  0x11   : > { %v1993_v3 = vor.u32 %v2584_v1, %v1992_v0  ;;  %v2000_v5 = vld [vmem:[#allocation2 + $0x1e8] sm:$0xf]  ;;  %v2585_v6 = vld [vmem:[#allocation2 + $0x1f4] sm:$0xf0]  ;;  %v1997_v7 = vor.u32 %v2582_v2, %v1994_v4  ;;  %v2583_v9 = vld [vmem:[#allocation2 + $0x1ec] sm:$0xf] }
  0x12   : > { %v2001_v8 = vor.u32 %v2585_v6, %v2000_v5  ;;  %v2002_v10 = vld [vmem:[#allocation2 + $0x1f8] sm:$0xf0]  ;;  %v1976_v11 = vld [vmem:[#allocation2 + $0x1c0] sm:$0xf]  ;;  %v2580_v13 = vld [vmem:[#allocation2 + $0x1cc] sm:$0xf0] }
  0x13   : > { %494 = vmatpush.bf16.msra.mxu0 %v1993_v3  ;;  %v2005_v12 = vor.u32 %v2583_v9, %v2002_v10  ;;  %v2578_v14 = vld [vmem:[#allocation2 + $0x1c4] sm:$0xf]  ;;  %v1978_v15 = vld [vmem:[#allocation2 + $0x1d0] sm:$0xf0]  ;;  %513 = vmatpush.bf16.msra.mxu1 %v1997_v7  ;;  %v1977_v16 = vor.u32 %v2580_v13, %v1976_v11  ;;  %v1984_v18 = vld [vmem:[#allocation2 + $0x1c8] sm:$0xf] }
  0x14   : > { %532 = vmatpush.bf16.msra.mxu2 %v2001_v8  ;;  %v1981_v17 = vor.u32 %v2578_v14, %v1978_v15  ;;  %v2581_v19 = vld [vmem:[#allocation2 + $0x1d4] sm:$0xf0]  ;;  %v2579_v20 = vld [vmem:[#allocation2 + $0x1cc] sm:$0xf]  ;;  %v1986_v22 = vld [vmem:[#allocation2 + $0x1d8] sm:$0xf0] }
  0x15   : > { %551 = vmatpush.bf16.msra.mxu3 %v2005_v12  ;;  %v1985_v21 = vor.u32 %v2581_v19, %v1984_v18  ;;  %v1960_v23 = vld [vmem:[#allocation2 + $0x1a0] sm:$0xf]  ;;  %v2576_v24 = vld [vmem:[#allocation2 + $0x1ac] sm:$0xf0]  ;;  %v1989_v25 = vor.u32 %v2579_v20, %v1986_v22  ;;  %v2574_v26 = vld [vmem:[#allocation2 + $0x1a4] sm:$0xf] }
  0x16   : > { %v1962_v27 = vld [vmem:[#allocation2 + $0x1b0] sm:$0xf0]  ;;  %v1968_v28 = vld [vmem:[#allocation2 + $0x1a8] sm:$0xf]  ;;  %v1961_v29 = vor.u32 %v2576_v24, %v1960_v23  ;;  %v2577_v30 = vld [vmem:[#allocation2 + $0x1b4] sm:$0xf0] }
  0x17   : > { %495 = vmatpush.bf16.msra.mxu0 %v1977_v16  ;;  %v2575_v31 = vld [vmem:[#allocation2 + $0x1ac] sm:$0xf]  ;;  %v1970_v32 = vld [vmem:[#allocation2 + $0x1b8] sm:$0xf0]  ;;  %514 = vmatpush.bf16.msra.mxu1 %v1981_v17  ;;  %v1965_v33 = vor.u32 %v2574_v26, %v1962_v27  ;;  %v1969_v34 = vor.u32 %v2577_v30, %v1968_v28  ;;  %v1944_v35 = vld [vmem:[#allocation2 + $0x180] sm:$0xf] }
  0x18   : > { %533 = vmatpush.bf16.msra.mxu2 %v1985_v21  ;;  %v2572_v36 = vld [vmem:[#allocation2 + $0x18c] sm:$0xf0]  ;;  %v2570_v37 = vld [vmem:[#allocation2 + $0x184] sm:$0xf]  ;;  %v1973_v38 = vor.u32 %v2575_v31, %v1970_v32  ;;  %v1946_v39 = vld [vmem:[#allocation2 + $0x190] sm:$0xf0] }
  0x19   : > { %552 = vmatpush.bf16.msra.mxu3 %v1989_v25  ;;  %v1952_v40 = vld [vmem:[#allocation2 + $0x188] sm:$0xf]  ;;  %v2573_v41 = vld [vmem:[#allocation2 + $0x194] sm:$0xf0]  ;;  %v2571_v42 = vld [vmem:[#allocation2 + $0x18c] sm:$0xf]  ;;  %v1945_v44 = vor.u32 %v2572_v36, %v1944_v35  ;;  %v1949_v45 = vor.u32 %v2570_v37, %v1946_v39 }
  0x1a   : > { %v1954_v43 = vld [vmem:[#allocation2 + $0x198] sm:$0xf0]  ;;  %s3070_s12 = smov (!%p207_p7, %s2773_s12), 1  ;;  %v1953_v46 = vor.u32 %v2573_v41, %v1952_v40  ;;  %v1928_v47 = vld [vmem:[#allocation2 + $0x160] sm:$0xf]  ;;  %vm1455_vm3 = vcmask 1045504  }
  0x1b   : > { %496 = vmatpush.bf16.msra.mxu0 %v1961_v29  ;;  %515 = vmatpush.bf16.msra.mxu1 %v1965_v33  ;;  %v2568_v48 = vld [vmem:[#allocation2 + $0x16c] sm:$0xf0]  ;;  %v2566_v49 = vld [vmem:[#allocation2 + $0x164] sm:$0xf]  ;;  %v1957_v50 = vor.u32 %v2571_v42, %v1954_v43  ;;  %v1930_v51 = vld [vmem:[#allocation2 + $0x170] sm:$0xf0] }
  0x1c   : > { %534 = vmatpush.bf16.msra.mxu2 %v1969_v34  ;;  %v1936_v52 = vld [vmem:[#allocation2 + $0x168] sm:$0xf]  ;;  %v2569_v53 = vld [vmem:[#allocation2 + $0x174] sm:$0xf0]  ;;  %v2567_v54 = vld [vmem:[#allocation2 + $0x16c] sm:$0xf]  ;;  %v1929_v56 = vor.u32 %v2568_v48, %v1928_v47  ;;  %v1933_v57 = vor.u32 %v2566_v49, %v1930_v51 }
  0x1d   : > { %553 = vmatpush.bf16.msra.mxu3 %v1973_v38  ;;  %v1938_v55 = vld [vmem:[#allocation2 + $0x178] sm:$0xf0]  ;;  %s2686_s24 = smul.u32 20, %s3070_s12  ;;  %v1937_v58 = vor.u32 %v2569_v53, %v1936_v52  ;;  %v1912_v59 = vld [vmem:[#allocation2 + $0x140] sm:$0xf]  ;;  %s2520_s30 = sshll.u32 %s3070_s12, 7 }
  0x1e   : > { %v2564_v60 = vld [vmem:[#allocation2 + $0x14c] sm:$0xf0]  ;;  %v2562_v61 = vld [vmem:[#allocation2 + $0x144] sm:$0xf]  ;;  %v1941_v62 = vor.u32 %v2567_v54, %v1938_v55  ;;  %v1914_v63 = vld [vmem:[#allocation2 + $0x150] sm:$0xf0]  ;;  %s2984_s6 = scalar_lea.vmem %s3064_s3, %s2520_s30 }
  0x1f   : > { %497 = vmatpush.bf16.msra.mxu0 %v1945_v44  ;;  %516 = vmatpush.bf16.msra.mxu1 %v1949_v45  ;;  %v1920_v0 = vld [vmem:[#allocation2 + $0x148] sm:$0xf]  ;;  %v2565_v1 = vld [vmem:[#allocation2 + $0x154] sm:$0xf0]  ;;  %v2563_v2 = vld [vmem:[#allocation2 + $0x14c] sm:$0xf]  ;;  %s2840_s27 = scalar_lea.vmem %s3061_s0, %s2686_s24  ;;  %v1913_v4 = vor.u32 %v2564_v60, %v1912_v59  ;;  %v1917_v7 = vor.u32 %v2562_v61, %v1914_v63 }
  0x20   : > { %535 = vmatpush.bf16.msra.mxu2 %v1953_v46  ;;  %v1922_v3 = vld [vmem:[#allocation2 + $0x158] sm:$0xf0]  ;;  %v1896_v5 = vld [vmem:[#allocation2 + $0x120] sm:$0xf]  ;;  %v2560_v6 = vld [vmem:[#allocation2 + $0x12c] sm:$0xf0]  ;;  %v1921_v8 = vor.u32 %v2565_v1, %v1920_v0 }
  0x21   : > { %554 = vmatpush.bf16.msra.mxu3 %v1957_v50  ;;  %v2558_v9 = vld [vmem:[#allocation2 + $0x124] sm:$0xf]  ;;  %v1898_v10 = vld [vmem:[#allocation2 + $0x130] sm:$0xf0]  ;;  %v1904_v11 = vld [vmem:[#allocation2 + $0x128] sm:$0xf]  ;;  %v1925_v12 = vor.u32 %v2563_v2, %v1922_v3  ;;  %v1897_v19 = vor.u32 %v2560_v6, %v1896_v5 }
  0x22   : > { %v2561_v13 = vld [vmem:[#allocation2 + $0x134] sm:$0xf0]  ;;  %v2843_v14 = vld [vmem:[%s2840_s27] sm:$0xff]   ;;  %v2846_v15 = vld [vmem:[%s2840_s27 + $0x8] sm:$0xff]  ;;  %v1901_v24 = vor.u32 %v2558_v9, %v1898_v10  ;;  %vm311_vm0 = vsmask.f32 7424 }
  0x23   : > { %498 = vmatpush.bf16.msra.mxu0 %v1929_v56  ;;  %517 = vmatpush.bf16.msra.mxu1 %v1933_v57  ;;  %v2559_v16 = vld [vmem:[#allocation2 + $0x12c] sm:$0xf]  ;;  %v1906_v17 = vld [vmem:[#allocation2 + $0x138] sm:$0xf0]  ;;  %v315_v18 = vshll.u32 %v2843_v14, 16  ;;  %v313_v22 = vshrl.u32 %v2843_v14, 16  ;;  %v1905_v25 = vor.u32 %v2561_v13, %v1904_v11 }
  0x24   : > { %536 = vmatpush.bf16.msra.mxu2 %v1937_v58  ;;  %v1880_v20 = vld [vmem:[#allocation2 + $0x100] sm:$0xf]  ;;  %v2556_v21 = vld [vmem:[#allocation2 + $0x10c] sm:$0xf0]  ;;  %v320_v23 = vshll.u32 %v2846_v15, 16  ;;  %v1909_v29 = vor.u32 %v2559_v16, %v1906_v17 }
  0x25   : > { %555 = vmatpush.bf16.msra.mxu3 %v1941_v62  ;;  %v2554_v26 = vld [vmem:[#allocation2 + $0x104] sm:$0xf]  ;;  %v1882_v27 = vld [vmem:[#allocation2 + $0x110] sm:$0xf0]  ;;  %v317_v28 = vrot.slane %v315_v18, 1  ;;  %v1881_v36 = vor.u32 %v2556_v21, %v1880_v20  ;;  %v324_v20 = vshrl.u32 %v2846_v15, 16 }
  0x26   : > { %v1888_v30 = vld [vmem:[#allocation2 + $0x108] sm:$0xf]  ;;  %v2557_v31 = vld [vmem:[#allocation2 + $0x114] sm:$0xf0]  ;;  %v2555_v32 = vld [vmem:[#allocation2 + $0x10c] sm:$0xf]  ;;  %v1885_v41 = vor.u32 %v2554_v26, %v1882_v27 }
  0x27   : > { %499 = vmatpush.bf16.msra.mxu0 %v1913_v4  ;;  %518 = vmatpush.bf16.msra.mxu1 %v1917_v7  ;;  %v1890_v33 = vld [vmem:[#allocation2 + $0x118] sm:$0xf0]  ;;  %v2128_v34 = vld [vmem:[#allocation2 + $0xe8] sm:$0xf]  ;;  %v2553_v35 = vld [vmem:[#allocation2 + $0xf4] sm:$0xf0]  ;;  %v318_v37 = vor.u32 %v317_v28, %v313_v22  ;;  %v1889_v42 = vor.u32 %v2557_v31, %v1888_v30 }
  0x28   : > { %537 = vmatpush.bf16.msra.mxu2 %v1921_v8  ;;  %v2853_v38 = vrot.slane %v320_v23, 1  ;;  %v2551_v39 = vld [vmem:[#allocation2 + $0xec] sm:$0xf]  ;;  %v2130_v40 = vld [vmem:[#allocation2 + $0xf8] sm:$0xf0]  ;;  %v1893_v43 = vor.u32 %v2555_v32, %v1890_v33  ;;  %v2129_v44 = vor.u32 %v2553_v35, %v2128_v34 }
  0x29   : > { %556 = vmatpush.bf16.msra.mxu3 %v1925_v12  ;;  %v2120_v45 = vld [vmem:[#allocation2 + $0xe0] sm:$0xf]  ;;  %v2552_v46 = vld [vmem:[#allocation2 + $0xec] sm:$0xf0]  ;;  %v2550_v47 = vld [vmem:[#allocation2 + $0xe4] sm:$0xf]  ;;  %v2133_v48 = vor.u32 %v2551_v39, %v2130_v40 }
  0x2a   : > { %v2122_v49 = vld [vmem:[#allocation2 + $0xf0] sm:$0xf0]  ;;  %v2112_v50 = vld [vmem:[#allocation2 + $0xc8] sm:$0xf]  ;;  %v2549_v51 = vld [vmem:[#allocation2 + $0xd4] sm:$0xf0]  ;;  %v323_v52 = vsel %vm311_vm0, %v318_v37, %v2853_v38  ;;  %v2121_v55 = vor.u32 %v2552_v46, %v2120_v45  ;;  %v326_v33 = vor.u32 %v324_v20, %v2853_v38 }
  0x2b   : > { %500 = vmatpush.bf16.msra.mxu0 %v1897_v19  ;;  %519 = vmatpush.bf16.msra.mxu1 %v1901_v24  ;;  %v2547_v53 = vld [vmem:[#allocation2 + $0xcc] sm:$0xf]  ;;  %v2114_v54 = vld [vmem:[#allocation2 + $0xd8] sm:$0xf0]  ;;  %v2104_v56 = vld [vmem:[#allocation2 + $0xc0] sm:$0xf]  ;;  %v2125_v57 = vor.u32 %v2550_v47, %v2122_v49  ;;  %v2113_v58 = vor.u32 %v2549_v51, %v2112_v50 }
  0x2c   : > { %538 = vmatpush.bf16.msra.mxu2 %v1905_v25  ;;  %v2548_v59 = vld [vmem:[#allocation2 + $0xcc] sm:$0xf0]  ;;  %v2546_v60 = vld [vmem:[#allocation2 + $0xc4] sm:$0xf]  ;;  %v2106_v61 = vld [vmem:[#allocation2 + $0xd0] sm:$0xf0]  ;;  %v2117_v62 = vor.u32 %v2547_v53, %v2114_v54 }
  0x2d   : > { %557 = vmatpush.bf16.msra.mxu3 %v1909_v29  ;;  %v2096_v63 = vld [vmem:[#allocation2 + $0xa8] sm:$0xf]  ;;  %v2545_v0 = vld [vmem:[#allocation2 + $0xb4] sm:$0xf0]  ;;  %v264_v1 = vld [vmem:[%s2840_s27 + $0x10] sm:$0x1]  ;;  %v2105_v5 = vor.u32 %v2548_v59, %v2104_v56  ;;  %v2109_v6 = vor.u32 %v2546_v60, %v2106_v61 }
  0x2e   : > { %v2543_v2 = vld [vmem:[#allocation2 + $0xac] sm:$0xf]  ;;  %v2098_v3 = vld [vmem:[#allocation2 + $0xb8] sm:$0xf0]  ;;  %v307_v4 = vunpack.c.l.b16 %v264_v1  ;;  %v2097_v7 = vor.u32 %v2545_v0, %v2096_v63  ;;  %v2088_v8 = vld [vmem:[#allocation2 + $0xa0] sm:$0xf] }
  0x2f   : > { %501 = vmatpush.bf16.msra.mxu0 %v1881_v36  ;;  %520 = vmatpush.bf16.msra.mxu1 %v1885_v41  ;;  %v2544_v9 = vld [vmem:[#allocation2 + $0xac] sm:$0xf0]  ;;  %v2542_v10 = vld [vmem:[#allocation2 + $0xa4] sm:$0xf]  ;;  %v2101_v12 = vor.u32 %v2543_v2, %v2098_v3  ;;  %v2090_v13 = vld [vmem:[#allocation2 + $0xb0] sm:$0xf0] }
  0x30   : > { %539 = vmatpush.bf16.msra.mxu2 %v1889_v42  ;;  %v2858_v11 = vpack.c.b16 %v307_v4, %v307_v4  ;;  %v2080_v16 = vld [vmem:[#allocation2 + $0x88] sm:$0xf]  ;;  %v2541_v17 = vld [vmem:[#allocation2 + $0x94] sm:$0xf0]  ;;  %v2539_v18 = vld [vmem:[#allocation2 + $0x8c] sm:$0xf]  ;;  %v2089_v22 = vor.u32 %v2544_v9, %v2088_v8  ;;  %v2093_v24 = vor.u32 %v2542_v10, %v2090_v13 }
  0x31   : > { %558 = vmatpush.bf16.msra.mxu3 %v1893_v43  ;;  %v2082_v19 = vld [vmem:[#allocation2 + $0x98] sm:$0xf0]  ;;  %v2081_v25 = vor.u32 %v2541_v17, %v2080_v16  ;;  %v2072_v26 = vld [vmem:[#allocation2 + $0x80] sm:$0xf]  ;;  %v2540_v27 = vld [vmem:[#allocation2 + $0x8c] sm:$0xf0] }
  0x32   : > { %502 = vmatmul.bf16.vlgmr.msra.gmra.mxu0 %v323_v52  ;;  %521 = vmatmul.bf16.vlgmr.msra.gmra.mxu1 %v323_v52  ;;  %v328_v21 = vshll.u32 %v2858_v11, 16  ;;  %v2538_v28 = vld [vmem:[#allocation2 + $0x84] sm:$0xf]  ;;  %v2085_v29 = vor.u32 %v2539_v18, %v2082_v19  ;;  %v2074_v30 = vld [vmem:[#allocation2 + $0x90] sm:$0xf0]  ;;  %v2073_v37 = vor.u32 %v2540_v27, %v2072_v26 }
  0x33   : > { %540 = vmatmul.bf16.vlgmr.msra.gmra.mxu2 %v323_v52  ;;  %732 = vmatpush.bf16.msrb.mxu0 %v2121_v55  ;;  %v2064_v31 = vld [vmem:[#allocation2 + $0x68] sm:$0xf]  ;;  %v2537_v32 = vld [vmem:[#allocation2 + $0x74] sm:$0xf0]  ;;  %v2535_v35 = vld [vmem:[#allocation2 + $0x6c] sm:$0xf]  ;;  %v2077_v39 = vor.u32 %v2538_v28, %v2074_v30 }
  0x34   : > { %770 = vmatpush.bf16.msrb.mxu2 %v2129_v44  ;;  %559 = vmatmul.bf16.vlgmr.msra.gmra.mxu3 %v323_v52  ;;  %v330_v34 = vrot.slane %v328_v21, 1  ;;  %v2066_v36 = vld [vmem:[#allocation2 + $0x78] sm:$0xf0]  ;;  %v2065_v40 = vor.u32 %v2537_v32, %v2064_v31  ;;  %v2056_v41 = vld [vmem:[#allocation2 + $0x60] sm:$0xf] }
  0x35   : > { %789 = vmatpush.bf16.msrb.mxu3 %v2133_v48  ;;  %751 = vmatpush.bf16.msrb.mxu1 %v2125_v57  ;;  %v2536_v42 = vld [vmem:[#allocation2 + $0x6c] sm:$0xf0]  ;;  %v2534_v43 = vld [vmem:[#allocation2 + $0x64] sm:$0xf]  ;;  %v2069_v44 = vor.u32 %v2535_v35, %v2066_v36  ;;  %v2058_v45 = vld [vmem:[#allocation2 + $0x70] sm:$0xf0] }
  0x36   : > { %v2048_v46 = vld [vmem:[#allocation2 + $0x48] sm:$0xf]  ;;  %v2533_v47 = vld [vmem:[#allocation2 + $0x54] sm:$0xf0]  ;;  %v331_v48 = vsel %vm311_vm0, %v326_v33, %v330_v34  ;;  %v2531_v38 = vld [vmem:[#allocation2 + $0x4c] sm:$0xf]  ;;  %v2057_v50 = vor.u32 %v2536_v42, %v2056_v41  ;;  %v2061_v51 = vor.u32 %v2534_v43, %v2058_v45 }
  0x37   : > { %733 = vmatpush.bf16.msrb.mxu0 %v2105_v5  ;;  %v2050_v49 = vld [vmem:[#allocation2 + $0x58] sm:$0xf0]  ;;  %v2049_v52 = vor.u32 %v2533_v47, %v2048_v46  ;;  %v2040_v53 = vld [vmem:[#allocation2 + $0x40] sm:$0xf]  ;;  %v2532_v54 = vld [vmem:[#allocation2 + $0x4c] sm:$0xf0] }
  0x38   : > { %771 = vmatpush.bf16.msrb.mxu2 %v2113_v58  ;;  %v2530_v55 = vld [vmem:[#allocation2 + $0x44] sm:$0xf]  ;;  %v2053_v56 = vor.u32 %v2531_v38, %v2050_v49  ;;  %v2042_v57 = vld [vmem:[#allocation2 + $0x50] sm:$0xf0]  ;;  %v2032_v58 = vld [vmem:[#allocation2 + $0x28] sm:$0xf] }
  0x39   : > { %790 = vmatpush.bf16.msrb.mxu3 %v2117_v62  ;;  %752 = vmatpush.bf16.msrb.mxu1 %v2109_v6  ;;  %v2529_v59 = vld [vmem:[#allocation2 + $0x34] sm:$0xf0]  ;;  %v2527_v60 = vld [vmem:[#allocation2 + $0x2c] sm:$0xf]  ;;  %v2034_v61 = vld [vmem:[#allocation2 + $0x38] sm:$0xf0]  ;;  %v2041_v62 = vor.u32 %v2532_v54, %v2040_v53  ;;  %v2045_v0 = vor.u32 %v2530_v55, %v2042_v57 }
  0x3a   : > { %v2024_v63 = vld [vmem:[#allocation2 + $0x20] sm:$0xf]  ;;  %v2033_v1 = vor.u32 %v2529_v59, %v2032_v58  ;;  %v2528_v2 = vld [vmem:[#allocation2 + $0x2c] sm:$0xf0]  ;;  %v2526_v3 = vld [vmem:[#allocation2 + $0x24] sm:$0xf]  ;;  %v2037_v5 = vor.u32 %v2527_v60, %v2034_v61 }
  0x3b   : > { %734 = vmatpush.bf16.msrb.mxu0 %v2089_v22  ;;  %v2026_v4 = vld [vmem:[#allocation2 + $0x30] sm:$0xf0]  ;;  %v2016_v6 = vld [vmem:[#allocation2 + $0x8] sm:$0xf]  ;;  %v2523_v8 = vld [vmem:[#allocation2 + $0xc] sm:$0xf]  ;;  %v2025_v13 = vor.u32 %v2528_v2, %v2024_v63 }
  0x3c   : > { %772 = vmatpush.bf16.msrb.mxu2 %v2097_v7  ;;  %v2525_v7 = vld [vmem:[#allocation2 + $0x14] sm:$0xf0]  ;;  %v2018_v9 = vld [vmem:[#allocation2 + $0x18] sm:$0xf0]  ;;  %v2256_v10 = vld [vmem:[#allocation2 + $0x2e8] sm:$0xf]  ;;  %v2029_v19 = vor.u32 %v2526_v3, %v2026_v4 }
  0x3d   : > { %791 = vmatpush.bf16.msrb.mxu3 %v2101_v12  ;;  %753 = vmatpush.bf16.msrb.mxu1 %v2093_v24  ;;  %v2617_v12 = vld [vmem:[#allocation2 + $0x2f4] sm:$0xf0]  ;;  %v2008_v16 = vld [vmem:[#allocation2] sm:$0xf]  ;;  %v2615_v17 = vld [vmem:[#allocation2 + $0x2ec] sm:$0xf]  ;;  %v2017_v21 = vor.u32 %v2525_v7, %v2016_v6  ;;  %v2021_v26 = vor.u32 %v2523_v8, %v2018_v9 }
  0x3e   : > { %v2258_v18 = vld [vmem:[#allocation2 + $0x2f8] sm:$0xf0]  ;;  %v2524_v22 = vld [vmem:[#allocation2 + $0xc] sm:$0xf0]  ;;  %v2522_v24 = vld [vmem:[#allocation2 + $0x4] sm:$0xf]  ;;  %v2257_v27 = vor.u32 %v2617_v12, %v2256_v10 }
  0x3f   : > { %735 = vmatpush.bf16.msrb.mxu0 %v2073_v37  ;;  %v2248_v28 = vld [vmem:[#allocation2 + $0x2e0] sm:$0xf]  ;;  %v2614_v30 = vld [vmem:[#allocation2 + $0x2e4] sm:$0xf]  ;;  %v2261_v31 = vor.u32 %v2615_v17, %v2258_v18  ;;  %v2250_v32 = vld [vmem:[#allocation2 + $0x2f0] sm:$0xf0]  ;;  %v2009_v35 = vor.u32 %v2524_v22, %v2008_v16 }
  0x40   : > { %773 = vmatpush.bf16.msrb.mxu2 %v2081_v25  ;;  %v2010_v25 = vld [vmem:[#allocation2 + $0x10] sm:$0xf0]  ;;  %v2240_v33 = vld [vmem:[#allocation2 + $0x2c8] sm:$0xf]  ;;  %v2613_v34 = vld [vmem:[#allocation2 + $0x2d4] sm:$0xf0]  ;;  %v2253_v41 = vor.u32 %v2614_v30, %v2250_v32 }
  0x41   : > { %792 = vmatpush.bf16.msrb.mxu3 %v2085_v29  ;;  %754 = vmatpush.bf16.msrb.mxu1 %v2077_v39  ;;  %v2616_v29 = vld [vmem:[#allocation2 + $0x2ec] sm:$0xf0]  ;;  %v2013_v36 = vor.u32 %v2522_v24, %v2010_v25  ;;  %v2611_v39 = vld [vmem:[#allocation2 + $0x2cc] sm:$0xf]  ;;  %v2241_v42 = vor.u32 %v2613_v34, %v2240_v33  ;;  %v2232_v43 = vld [vmem:[#allocation2 + $0x2c0] sm:$0xf] }
  0x42   : > { %507 = vmatmul.bf16.gmra.mxu0 %v331_v48  ;;  %526 = vmatmul.bf16.gmra.mxu1 %v331_v48  ;;  %v2249_v37 = vor.u32 %v2616_v29, %v2248_v28  ;;  %v2610_v45 = vld [vmem:[#allocation2 + $0x2c4] sm:$0xf]  ;;  %v2234_v46 = vld [vmem:[#allocation2 + $0x2d0] sm:$0xf0]  ;;  %v2224_v47 = vld [vmem:[#allocation2 + $0x2a8] sm:$0xf] }
  0x43   : > { %545 = vmatmul.bf16.gmra.mxu2 %v331_v48  ;;  %736 = vmatpush.bf16.msrb.mxu0 %v2057_v50  ;;  %v2607_v50 = vld [vmem:[#allocation2 + $0x2ac] sm:$0xf]  ;;  %v2216_v54 = vld [vmem:[#allocation2 + $0x2a0] sm:$0xf]  ;;  %v2608_v55 = vld [vmem:[#allocation2 + $0x2ac] sm:$0xf0] }
  0x44   : > { %774 = vmatpush.bf16.msrb.mxu2 %v2065_v40  ;;  %564 = vmatmul.bf16.gmra.mxu3 %v331_v48  ;;  %v2242_v40 = vld [vmem:[#allocation2 + $0x2d8] sm:$0xf0]  ;;  %v2609_v48 = vld [vmem:[#allocation2 + $0x2b4] sm:$0xf0]  ;;  %v2218_v57 = vld [vmem:[#allocation2 + $0x2b0] sm:$0xf0]  ;;  %v2217_v61 = vor.u32 %v2608_v55, %v2216_v54 }
  0x45   : > { %793 = vmatpush.bf16.msrb.mxu3 %v2069_v44  ;;  %755 = vmatpush.bf16.msrb.mxu1 %v2061_v51  ;;  %v2612_v44 = vld [vmem:[#allocation2 + $0x2cc] sm:$0xf0]  ;;  %v2245_v38 = vor.u32 %v2611_v39, %v2242_v40  ;;  %v2226_v51 = vld [vmem:[#allocation2 + $0x2b8] sm:$0xf0]  ;;  %v2225_v53 = vor.u32 %v2609_v48, %v2224_v47  ;;  %v2208_v58 = vld [vmem:[#allocation2 + $0x288] sm:$0xf] }
  0x46   : > { %v2233_v49 = vor.u32 %v2612_v44, %v2232_v43  ;;  %v2605_v59 = vld [vmem:[#allocation2 + $0x294] sm:$0xf0]  ;;  %v2229_v60 = vor.u32 %v2607_v50, %v2226_v51  ;;  %v2210_v63 = vld [vmem:[#allocation2 + $0x298] sm:$0xf0]  ;;  %v2200_v2 = vld [vmem:[#allocation2 + $0x280] sm:$0xf]  ;;  %v2685_v50 = vunpack.c.h.b16 %v2843_v14 }
  0x47   : > { %737 = vmatpush.bf16.msrb.mxu0 %v2041_v62  ;;  %v2603_v62 = vld [vmem:[#allocation2 + $0x28c] sm:$0xf]  ;;  %v2604_v3 = vld [vmem:[#allocation2 + $0x28c] sm:$0xf0]  ;;  %v2602_v4 = vld [vmem:[#allocation2 + $0x284] sm:$0xf] }
  0x48   : > { %775 = vmatpush.bf16.msrb.mxu2 %v2049_v52  ;;  %v2237_v52 = vor.u32 %v2610_v45, %v2234_v46  ;;  %v2192_v6 = vld [vmem:[#allocation2 + $0x268] sm:$0xf]  ;;  %v2601_v7 = vld [vmem:[#allocation2 + $0x274] sm:$0xf0]  ;;  %v2213_v8 = vor.u32 %v2603_v62, %v2210_v63  ;;  %v2201_v9 = vor.u32 %v2604_v3, %v2200_v2  ;;  %v2599_v10 = vld [vmem:[#allocation2 + $0x26c] sm:$0xf] }
  0x49   : > { %794 = vmatpush.bf16.msrb.mxu3 %v2053_v56  ;;  %756 = vmatpush.bf16.msrb.mxu1 %v2045_v0  ;;  %v2606_v56 = vld [vmem:[#allocation2 + $0x2a4] sm:$0xf]  ;;  %v2194_v12 = vld [vmem:[#allocation2 + $0x278] sm:$0xf0]  ;;  %v2193_v16 = vor.u32 %v2601_v7, %v2192_v6  ;;  %v2184_v17 = vld [vmem:[#allocation2 + $0x260] sm:$0xf] }
  0x4a   : > { %v2221_v0 = vor.u32 %v2606_v56, %v2218_v57  ;;  %v2600_v18 = vld [vmem:[#allocation2 + $0x26c] sm:$0xf0]  ;;  %v2176_v22 = vld [vmem:[#allocation2 + $0x248] sm:$0xf]  ;;  %v2597_v24 = vld [vmem:[#allocation2 + $0x254] sm:$0xf0]  ;;  %v2197_v25 = vor.u32 %v2599_v10, %v2194_v12 }
  0x4b   : > { %738 = vmatpush.bf16.msrb.mxu0 %v2025_v13  ;;  %v2178_v28 = vld [vmem:[#allocation2 + $0x258] sm:$0xf0]  ;;  %v2177_v30 = vor.u32 %v2597_v24, %v2176_v22  ;;  %v2596_v32 = vld [vmem:[#allocation2 + $0x24c] sm:$0xf0]  ;;  %v2594_v33 = vld [vmem:[#allocation2 + $0x244] sm:$0xf] }
  0x4c   : > { %776 = vmatpush.bf16.msrb.mxu2 %v2033_v1  ;;  %v2209_v1 = vor.u32 %v2605_v59, %v2208_v58  ;;  %v2170_v34 = vld [vmem:[#allocation2 + $0x250] sm:$0xf0]  ;;  %v2591_v40 = vld [vmem:[#allocation2 + $0x22c] sm:$0xf]  ;;  %v2152_v45 = vld [vmem:[#allocation2 + $0x220] sm:$0xf] }
  0x4d   : > { %795 = vmatpush.bf16.msrb.mxu3 %v2037_v5  ;;  %757 = vmatpush.bf16.msrb.mxu1 %v2029_v19  ;;  %v2202_v5 = vld [vmem:[#allocation2 + $0x290] sm:$0xf0]  ;;  %v2598_v19 = vld [vmem:[#allocation2 + $0x264] sm:$0xf]  ;;  %v2173_v43 = vor.u32 %v2594_v33, %v2170_v34  ;;  %v2592_v46 = vld [vmem:[#allocation2 + $0x22c] sm:$0xf0] }
  0x4e   : > { %v2205_v13 = vor.u32 %v2602_v4, %v2202_v5  ;;  %v2590_v47 = vld [vmem:[#allocation2 + $0x224] sm:$0xf]  ;;  %v2154_v48 = vld [vmem:[#allocation2 + $0x230] sm:$0xf0]  ;;  %v2153_v55 = vor.u32 %v2592_v46, %v2152_v45  ;;  %v2587_v56 = vld [vmem:[#allocation2 + $0x20c] sm:$0xf] }
  0x4f   : > { %739 = vmatpush.bf16.msrb.mxu0 %v2009_v35  ;;  %v2160_v35 = vld [vmem:[#allocation2 + $0x228] sm:$0xf]  ;;  %v2146_v57 = vld [vmem:[#allocation2 + $0x218] sm:$0xf0]  ;;  %v2136_v58 = vld [vmem:[#allocation2 + $0x200] sm:$0xf]  ;;  %v2157_v59 = vor.u32 %v2590_v47, %v2154_v48 }
  0x50   : > { %777 = vmatpush.bf16.msrb.mxu2 %v2017_v21  ;;  %v2186_v21 = vld [vmem:[#allocation2 + $0x270] sm:$0xf0]  ;;  %v2586_v62 = vld [vmem:[#allocation2 + $0x204] sm:$0xf]  ;;  %v2386_v2 = vld [vmem:[#allocation2 + $0x3f8] sm:$0xf0] }
  0x51   : > { %796 = vmatpush.bf16.msrb.mxu3 %v2021_v26  ;;  %758 = vmatpush.bf16.msrb.mxu1 %v2013_v36  ;;  %v2185_v26 = vor.u32 %v2600_v18, %v2184_v17  ;;  %v2189_v29 = vor.u32 %v2598_v19, %v2186_v21  ;;  %v2593_v36 = vld [vmem:[#allocation2 + $0x234] sm:$0xf0]  ;;  %v2138_v63 = vld [vmem:[#allocation2 + $0x210] sm:$0xf0]  ;;  %v2376_v3 = vld [vmem:[#allocation2 + $0x3e0] sm:$0xf] }
  0x52   : > { %740 = vmatmul.bf16.vlgmr.msrb.gmra.mxu0 %v2843_v14  ;;  %v2161_v44 = vor.u32 %v2593_v36, %v2160_v35  ;;  %v2648_v5 = vld [vmem:[#allocation2 + $0x3ec] sm:$0xf0]  ;;  %v2646_v6 = vld [vmem:[#allocation2 + $0x3e4] sm:$0xf]  ;;  %v2378_v7 = vld [vmem:[#allocation2 + $0x3f0] sm:$0xf0] }
  0x53   : > { %1013 = vmatpush.bf16.msra.mxu0 %v2249_v37  ;;  %778 = vmatmul.bf16.vlgmr.msrb.gmra.mxu2 %v2843_v14  ;;  %v2368_v10 = vld [vmem:[#allocation2 + $0x3c8] sm:$0xf]  ;;  %v2645_v12 = vld [vmem:[#allocation2 + $0x3d4] sm:$0xf0]  ;;  %v2377_v17 = vor.u32 %v2648_v5, %v2376_v3  ;;  %v2381_v18 = vor.u32 %v2646_v6, %v2378_v7  ;;  %v2643_v19 = vld [vmem:[#allocation2 + $0x3cc] sm:$0xf] }
  0x54   : > { %1051 = vmatpush.bf16.msra.mxu2 %v2257_v27  ;;  %759 = vmatmul.bf16.vlgmr.msrb.gmra.mxu1 %v2843_v14  ;;  %v2595_v27 = vld [vmem:[#allocation2 + $0x24c] sm:$0xf]  ;;  %v2370_v21 = vld [vmem:[#allocation2 + $0x3d8] sm:$0xf0]  ;;  %v847_v24 = vrot.slane %v2846_v15, 1 }
  0x55   : > { %1070 = vmatpush.bf16.msra.mxu3 %v2261_v31  ;;  %1032 = vmatpush.bf16.msra.mxu1 %v2253_v41  ;;  %v2168_v31 = vld [vmem:[#allocation2 + $0x240] sm:$0xf]  ;;  %v2181_v37 = vor.u32 %v2595_v27, %v2178_v28  ;;  %v2162_v41 = vld [vmem:[#allocation2 + $0x238] sm:$0xf0]  ;;  %v2644_v27 = vld [vmem:[#allocation2 + $0x3cc] sm:$0xf0]  ;;  %v2373_v28 = vor.u32 %v2643_v19, %v2370_v21 }
  0x56   : > { %797 = vmatmul.bf16.vlgmr.msrb.gmra.mxu3 %v2843_v14  ;;  %v2169_v39 = vor.u32 %v2596_v32, %v2168_v31  ;;  %v2165_v54 = vor.u32 %v2591_v40, %v2162_v41  ;;  %v2352_v31 = vld [vmem:[#allocation2 + $0x3a8] sm:$0xf]  ;;  %v2641_v32 = vld [vmem:[#allocation2 + $0x3b4] sm:$0xf0]  ;;  %v2639_v33 = vld [vmem:[#allocation2 + $0x3ac] sm:$0xf] }
  0x57   : > { %1014 = vmatpush.bf16.msra.mxu0 %v2233_v49  ;;  %v2589_v49 = vld [vmem:[#allocation2 + $0x214] sm:$0xf0]  ;;  %v2354_v34 = vld [vmem:[#allocation2 + $0x3b8] sm:$0xf0]  ;;  %v2640_v40 = vld [vmem:[#allocation2 + $0x3ac] sm:$0xf0]  ;;  %v2353_v41 = vor.u32 %v2641_v32, %v2352_v31 }
  0x58   : > { %1052 = vmatpush.bf16.msra.mxu2 %v2241_v42  ;;  %v808_v42 = vld [vmem:[%s2840_s27] sm:$0xe]  ;;  %v2336_v45 = vld [vmem:[#allocation2 + $0x388] sm:$0xf]  ;;  %v2637_v46 = vld [vmem:[#allocation2 + $0x394] sm:$0xf0] }
  0x59   : > { %1071 = vmatpush.bf16.msra.mxu3 %v2245_v38  ;;  %1033 = vmatpush.bf16.msra.mxu1 %v2237_v52  ;;  %v2144_v38 = vld [vmem:[#allocation2 + $0x208] sm:$0xf]  ;;  %v843_v51 = vunpack.c.l.b16 %v808_v42  ;;  %v2357_v42 = vor.u32 %v2639_v33, %v2354_v34  ;;  %v2635_v47 = vld [vmem:[#allocation2 + $0x38c] sm:$0xf]  ;;  %v2338_v48 = vld [vmem:[#allocation2 + $0x398] sm:$0xf0] }
  0x5a   : > { %v2384_v52 = vld [vmem:[#allocation2 + $0x3e8] sm:$0xf]  ;;  %v2630_v3 = vld [vmem:[#allocation2 + $0x364] sm:$0xf]  ;;  %v2314_v5 = vld [vmem:[#allocation2 + $0x370] sm:$0xf0] }
  0x5b   : > { %1015 = vmatpush.bf16.msra.mxu0 %v2217_v61  ;;  %v2588_v61 = vld [vmem:[#allocation2 + $0x20c] sm:$0xf0]  ;;  %v2878_v4 = vpack.c.b16 %v2685_v50, %v843_v51  ;;  %v2328_v51 = vld [vmem:[#allocation2 + $0x380] sm:$0xf]  ;;  %v2304_v6 = vld [vmem:[#allocation2 + $0x348] sm:$0xf] }
  0x5c   : > { %1053 = vmatpush.bf16.msra.mxu2 %v2225_v53  ;;  %v2649_v53 = vld [vmem:[#allocation2 + $0x3f4] sm:$0xf0]  ;;  %v2626_v21 = vld [vmem:[#allocation2 + $0x344] sm:$0xf]  ;;  %v2624_v32 = vld [vmem:[#allocation2 + $0x32c] sm:$0xf0] }
  0x5d   : > { %1072 = vmatpush.bf16.msra.mxu3 %v2229_v60  ;;  %1034 = vmatpush.bf16.msra.mxu1 %v2221_v0  ;;  %v2145_v60 = vor.u32 %v2589_v49, %v2144_v38  ;;  %v2385_v0 = vor.u32 %v2649_v53, %v2384_v52  ;;  %v846_v22 = vrot.slane %v2878_v4, 1  ;;  %v2636_v52 = vld [vmem:[#allocation2 + $0x38c] sm:$0xf0]  ;;  %v2337_v53 = vor.u32 %v2637_v46, %v2336_v45  ;;  %v2629_v7 = vld [vmem:[#allocation2 + $0x354] sm:$0xf0] }
  0x5e   : > { %v2622_v33 = vld [vmem:[#allocation2 + $0x324] sm:$0xf]  ;;  %v2282_v34 = vld [vmem:[#allocation2 + $0x330] sm:$0xf0]  ;;  %v2620_v45 = vld [vmem:[#allocation2 + $0x30c] sm:$0xf0] }
  0x5f   : > { %1016 = vmatpush.bf16.msra.mxu0 %v2201_v9  ;;  %v2137_v9 = vor.u32 %v2588_v61, %v2136_v58  ;;  %v848_v35 = vsel %vm845_vm1, %v846_v22, %v847_v24  ;;  %v2633_v58 = vld [vmem:[#allocation2 + $0x374] sm:$0xf0]  ;;  %v2329_v61 = vor.u32 %v2636_v52, %v2328_v51  ;;  %v2298_v22 = vld [vmem:[#allocation2 + $0x350] sm:$0xf0]  ;;  %v2618_v51 = vld [vmem:[#allocation2 + $0x304] sm:$0xf] }
  0x60   : > { %1054 = vmatpush.bf16.msra.mxu2 %v2209_v1  ;;  %v2647_v1 = vld [vmem:[#allocation2 + $0x3ec] sm:$0xf]  ;;  %v2301_v31 = vor.u32 %v2626_v21, %v2298_v22  ;;  %v2681_v46 = vld [vmem:[#allocation2 + $0x4f4] sm:$0xf0]  ;;  %v2266_v52 = vld [vmem:[#allocation2 + $0x310] sm:$0xf0] }
  0x61   : > { %1073 = vmatpush.bf16.msra.mxu3 %v2213_v8  ;;  %1035 = vmatpush.bf16.msra.mxu1 %v2205_v13  ;;  %v2149_v8 = vor.u32 %v2587_v56, %v2146_v57  ;;  %v2141_v13 = vor.u32 %v2586_v62, %v2138_v63  ;;  %v2330_v56 = vld [vmem:[#allocation2 + $0x390] sm:$0xf0]  ;;  %v2320_v57 = vld [vmem:[#allocation2 + $0x368] sm:$0xf]  ;;  %v2312_v63 = vld [vmem:[#allocation2 + $0x360] sm:$0xf] }
  0x62   : > { %745 = vmatmul.bf16.gmra.mxu0 %v2846_v15  ;;  %vm1142_vm2 = vsmask.f32 6400  ;;  %v2673_v21 = vld [vmem:[#allocation2 + $0x4b4] sm:$0xf0] }
  0x63   : > { %1017 = vmatpush.bf16.msra.mxu0 %v2185_v26  ;;  %783 = vmatmul.bf16.gmra.mxu2 %v2846_v15  ;;  %v2360_v26 = vld [vmem:[#allocation2 + $0x3c0] sm:$0xf] }
  0x64   : > { %1055 = vmatpush.bf16.msra.mxu2 %v2193_v16  ;;  %764 = vmatmul.bf16.gmra.mxu1 %v2846_v15  ;;  %v2389_v16 = vor.u32 %v2647_v1, %v2386_v2  ;;  %v2361_v36 = vor.u32 %v2644_v27, %v2360_v26  ;;  %v2321_v1 = vor.u32 %v2633_v58, %v2320_v57  ;;  %v2625_v26 = vld [vmem:[#allocation2 + $0x334] sm:$0xf0]  ;;  %v2623_v27 = vld [vmem:[#allocation2 + $0x32c] sm:$0xf]  ;;  %v2504_v58 = vld [vmem:[#allocation2 + $0x4e0] sm:$0xf] }
  0x65   : > { %1074 = vmatpush.bf16.msra.mxu3 %v2197_v25  ;;  %1036 = vmatpush.bf16.msra.mxu1 %v2189_v29  ;;  %v2369_v25 = vor.u32 %v2645_v12, %v2368_v10  ;;  %v2642_v29 = vld [vmem:[#allocation2 + $0x3c4] sm:$0xf]  ;;  %v849_v10 = vrot.slane %v2858_v11, 1 }
  0x66   : > { %802 = vmatmul.bf16.gmra.mxu3 %v2846_v15 }
  0x67   : > { %1018 = vmatpush.bf16.msra.mxu0 %v2169_v39  ;;  %v2344_v39 = vld [vmem:[#allocation2 + $0x3a0] sm:$0xf]  ;;  %v850_v11 = vsel %vm845_vm1, %v847_v24, %v849_v10  ;;  %v2619_v24 = vld [vmem:[#allocation2 + $0x30c] sm:$0xf]  ;;  %v2676_v10 = vld [vmem:[#allocation2 + $0x4cc] sm:$0xf0] }
  0x68   : > { %1056 = vmatpush.bf16.msra.mxu2 %v2177_v30  ;;  %v2362_v30 = vld [vmem:[#allocation2 + $0x3d0] sm:$0xf0]  ;;  %v2345_v38 = vor.u32 %v2640_v40, %v2344_v39  ;;  %v2621_v39 = vld [vmem:[#allocation2 + $0x314] sm:$0xf0]  ;;  %v1144_v40 = vshrl.u32 %v2878_v4, 16 }
  0x69   : > { %1075 = vmatpush.bf16.msra.mxu3 %v2181_v37  ;;  %1037 = vmatpush.bf16.msra.mxu1 %v2173_v43  ;;  %v2365_v37 = vor.u32 %v2642_v29, %v2362_v30  ;;  %v2638_v43 = vld [vmem:[#allocation2 + $0x3a4] sm:$0xf]  ;;  %v2280_v29 = vld [vmem:[#allocation2 + $0x320] sm:$0xf] }
  0x6b   : > { %1019 = vmatpush.bf16.msra.mxu0 %v2153_v55  ;;  %v2634_v55 = vld [vmem:[#allocation2 + $0x384] sm:$0xf] }
  0x6c   : > { %1057 = vmatpush.bf16.msra.mxu2 %v2161_v44  ;;  %v2346_v44 = vld [vmem:[#allocation2 + $0x3b0] sm:$0xf0]  ;;  %v2333_v62 = vor.u32 %v2634_v55, %v2330_v56  ;;  %v1146_v56 = vrot.slane %v1144_v40, 1  ;;  %v2667_v40 = vld [vmem:[#allocation2 + $0x48c] sm:$0xf] }
  0x6d   : > { %1076 = vmatpush.bf16.msra.mxu3 %v2165_v54  ;;  %1038 = vmatpush.bf16.msra.mxu1 %v2157_v59  ;;  %v2349_v49 = vor.u32 %v2638_v43, %v2346_v44  ;;  %v2341_v54 = vor.u32 %v2635_v47, %v2338_v48  ;;  %v2631_v59 = vld [vmem:[#allocation2 + $0x36c] sm:$0xf]  ;;  %v2512_v43 = vld [vmem:[#allocation2 + $0x4e8] sm:$0xf]  ;;  %v2264_v44 = vld [vmem:[#allocation2 + $0x300] sm:$0xf] }
  0x6e   : > { %v2679_v47 = vld [vmem:[#allocation2 + $0x4ec] sm:$0xf]  ;;  %v2514_v48 = vld [vmem:[#allocation2 + $0x4f8] sm:$0xf0]  ;;  %v2265_v15 = vor.u32 %v2620_v45, %v2264_v44  ;;  %v2458_v44 = vld [vmem:[#allocation2 + $0x490] sm:$0xf0] }
  0x6f   : > { %1020 = vmatpush.bf16.msra.mxu0 %v2137_v9  ;;  %v2306_v9 = vld [vmem:[#allocation2 + $0x358] sm:$0xf0] }
  0x70   : > { %1058 = vmatpush.bf16.msra.mxu2 %v2145_v60  ;;  %v2322_v60 = vld [vmem:[#allocation2 + $0x378] sm:$0xf0] }
  0x71   : > { %1077 = vmatpush.bf16.msra.mxu3 %v2149_v8  ;;  %1039 = vmatpush.bf16.msra.mxu1 %v2141_v13  ;;  %v2325_v2 = vor.u32 %v2631_v59, %v2322_v60  ;;  %v2627_v8 = vld [vmem:[#allocation2 + $0x34c] sm:$0xf]  ;;  %v2317_v13 = vor.u32 %v2630_v3, %v2314_v5  ;;  %v2680_v59 = vld [vmem:[#allocation2 + $0x4ec] sm:$0xf0]  ;;  %v2513_v60 = vor.u32 %v2681_v46, %v2512_v43  ;;  %v2666_v43 = vld [vmem:[#allocation2 + $0x484] sm:$0xf] }
  0x72   : > { %1021 = vmatmul.bf16.vlgmr.msra.gmra.mxu0 %v848_v35  ;;  %v2309_v19 = vor.u32 %v2627_v8, %v2306_v9  ;;  %v1105_v3 = vld [vmem:[%s2840_s27 + $0x10] sm:$0x3]  ;;  %v2505_v5 = vor.u32 %v2680_v59, %v2504_v58 }
  0x73   : > { %1326 = vmatpush.bf16.msrb.mxu0 %v2377_v17  ;;  %1059 = vmatmul.bf16.vlgmr.msra.gmra.mxu2 %v848_v35  ;;  %v2628_v17 = vld [vmem:[#allocation2 + $0x34c] sm:$0xf0] }
  0x74   : > { %1364 = vmatpush.bf16.msrb.mxu2 %v2385_v0  ;;  %1040 = vmatmul.bf16.vlgmr.msra.gmra.mxu1 %v848_v35  ;;  %v2632_v0 = vld [vmem:[#allocation2 + $0x36c] sm:$0xf0] }
  0x75   : > { %1383 = vmatpush.bf16.msrb.mxu3 %v2389_v16  ;;  %1345 = vmatpush.bf16.msrb.mxu1 %v2381_v18  ;;  %v2313_v12 = vor.u32 %v2632_v0, %v2312_v63  ;;  %v2296_v16 = vld [vmem:[#allocation2 + $0x340] sm:$0xf]  ;;  %v2305_v18 = vor.u32 %v2629_v7, %v2304_v6  ;;  %v2506_v63 = vld [vmem:[#allocation2 + $0x4f0] sm:$0xf0]  ;;  %v2496_v0 = vld [vmem:[#allocation2 + $0x4c8] sm:$0xf] }
  0x76   : > { %1078 = vmatmul.bf16.vlgmr.msra.gmra.mxu3 %v848_v35  ;;  %v2297_v30 = vor.u32 %v2628_v17, %v2296_v16  ;;  %v2488_v7 = vld [vmem:[#allocation2 + $0x4c0] sm:$0xf] }
  0x77   : > { %1327 = vmatpush.bf16.msrb.mxu0 %v2361_v36  ;;  %v2489_v22 = vor.u32 %v2676_v10, %v2488_v7  ;;  %v2657_v10 = vld [vmem:[#allocation2 + $0x434] sm:$0xf0] }
  0x78   : > { %1365 = vmatpush.bf16.msrb.mxu2 %v2369_v25  ;;  %v2288_v25 = vld [vmem:[#allocation2 + $0x328] sm:$0xf] }
  0x79   : > { %1384 = vmatpush.bf16.msrb.mxu3 %v2373_v28  ;;  %1346 = vmatpush.bf16.msrb.mxu1 %v2365_v37  ;;  %v2290_v28 = vld [vmem:[#allocation2 + $0x338] sm:$0xf0]  ;;  %v2289_v35 = vor.u32 %v2625_v26, %v2288_v25  ;;  %v2272_v37 = vld [vmem:[#allocation2 + $0x308] sm:$0xf]  ;;  %v2671_v26 = vld [vmem:[#allocation2 + $0x4ac] sm:$0xf] }
  0x7a   : > { %v2293_v36 = vor.u32 %v2623_v27, %v2290_v28  ;;  %v2482_v27 = vld [vmem:[#allocation2 + $0x4b8] sm:$0xf0]  ;;  %v2472_v28 = vld [vmem:[#allocation2 + $0x4a0] sm:$0xf] }
  0x7b   : > { %1328 = vmatpush.bf16.msrb.mxu0 %v2345_v38  ;;  %v2281_v38 = vor.u32 %v2624_v32, %v2280_v29  ;;  %v2670_v29 = vld [vmem:[#allocation2 + $0x4a4] sm:$0xf] }
  0x7c   : > { %1366 = vmatpush.bf16.msrb.mxu2 %v2353_v41  ;;  %v1147_v41 = vshll.u32 %v2878_v4, 16  ;;  %v1151_v4 = vrot.slane %v324_v20, 1  ;;  %v2498_v20 = vld [vmem:[#allocation2 + $0x4d8] sm:$0xf0] }
  0x7d   : > { %1385 = vmatpush.bf16.msrb.mxu3 %v2357_v42  ;;  %1347 = vmatpush.bf16.msrb.mxu1 %v2349_v49  ;;  %v2274_v42 = vld [vmem:[#allocation2 + $0x318] sm:$0xf0]  ;;  %v2285_v49 = vor.u32 %v2622_v33, %v2282_v34  ;;  %v2485_v34 = vor.u32 %v2671_v26, %v2482_v27 }
  0x7e   : > { %v2277_v55 = vor.u32 %v2619_v24, %v2274_v42  ;;  %v1149_v57 = vrot.slane %v1147_v41, 2  ;;  %v2466_v41 = vld [vmem:[#allocation2 + $0x498] sm:$0xf0]  ;;  %v2456_v24 = vld [vmem:[#allocation2 + $0x480] sm:$0xf] }
  0x7f   : > { %1329 = vmatpush.bf16.msrb.mxu0 %v2329_v61  ;;  %v2517_v61 = vor.u32 %v2679_v47, %v2514_v48  ;;  %v2668_v42 = vld [vmem:[#allocation2 + $0x48c] sm:$0xf0]  ;;  %v2469_v48 = vor.u32 %v2667_v40, %v2466_v41  ;;  %v2394_v40 = vld [vmem:[#allocation2 + $0x410] sm:$0xf0] }
  0x80   : > { %1367 = vmatpush.bf16.msrb.mxu2 %v2337_v53  ;;  %v1152_v53 = vrot.slane %v320_v23, 2  ;;  %v2269_v23 = vor.u32 %v2618_v51, %v2266_v52  ;;  %v1150_v16 = vor.u32 %v1149_v57, %v1146_v56  ;;  %v2457_v51 = vor.u32 %v2668_v42, %v2456_v24  ;;  %v2662_v56 = vld [vmem:[#allocation2 + $0x464] sm:$0xf]  ;;  %v2442_v57 = vld [vmem:[#allocation2 + $0x470] sm:$0xf0] }
  0x81   : > { %1386 = vmatpush.bf16.msrb.mxu3 %v2341_v54  ;;  %1348 = vmatpush.bf16.msrb.mxu1 %v2333_v62  ;;  %v2273_v54 = vor.u32 %v2621_v39, %v2272_v37  ;;  %v2678_v62 = vld [vmem:[#allocation2 + $0x4e4] sm:$0xf]  ;;  %v2461_v52 = vor.u32 %v2666_v43, %v2458_v44 }
  0x82   : > { %1026 = vmatmul.bf16.gmra.mxu0 %v850_v11  ;;  %v2509_v6 = vor.u32 %v2678_v62, %v2506_v63  ;;  %v2896_v17 = vor.u32 %v1152_v53, %v1151_v4  ;;  %v2663_v4 = vld [vmem:[#allocation2 + $0x46c] sm:$0xf]  ;;  %v2450_v53 = vld [vmem:[#allocation2 + $0x478] sm:$0xf0]  ;;  %v2432_v62 = vld [vmem:[#allocation2 + $0x448] sm:$0xf] }
  0x83   : > { %1330 = vmatpush.bf16.msrb.mxu0 %v2313_v12  ;;  %1064 = vmatmul.bf16.gmra.mxu2 %v850_v11  ;;  %v2674_v12 = vld [vmem:[#allocation2 + $0x4c4] sm:$0xf]  ;;  %v2661_v63 = vld [vmem:[#allocation2 + $0x454] sm:$0xf0] }
  0x84   : > { %1368 = vmatpush.bf16.msrb.mxu2 %v2321_v1  ;;  %1045 = vmatmul.bf16.gmra.mxu1 %v850_v11  ;;  %v2677_v1 = vld [vmem:[#allocation2 + $0x4d4] sm:$0xf0]  ;;  %v2433_v7 = vor.u32 %v2661_v63, %v2432_v62 }
  0x85   : > { %1387 = vmatpush.bf16.msrb.mxu3 %v2325_v2  ;;  %1349 = vmatpush.bf16.msrb.mxu1 %v2317_v13  ;;  %v2675_v2 = vld [vmem:[#allocation2 + $0x4cc] sm:$0xf]  ;;  %v2497_v8 = vor.u32 %v2677_v1, %v2496_v0  ;;  %v2490_v13 = vld [vmem:[#allocation2 + $0x4d0] sm:$0xf0]  ;;  %v2445_v1 = vor.u32 %v2662_v56, %v2442_v57 }
  0x86   : > { %1083 = vmatmul.bf16.gmra.mxu3 %v850_v11  ;;  %v2501_v9 = vor.u32 %v2675_v2, %v2498_v20  ;;  %v2493_v25 = vor.u32 %v2674_v12, %v2490_v13  ;;  %v2672_v11 = vld [vmem:[#allocation2 + $0x4ac] sm:$0xf0]  ;;  %v2659_v2 = vld [vmem:[#allocation2 + $0x44c] sm:$0xf]  ;;  %v2434_v20 = vld [vmem:[#allocation2 + $0x458] sm:$0xf0] }
  0x87   : > { %1331 = vmatpush.bf16.msrb.mxu0 %v2297_v30  ;;  %v2474_v30 = vld [vmem:[#allocation2 + $0x4b0] sm:$0xf0]  ;;  %v2473_v37 = vor.u32 %v2672_v11, %v2472_v28  ;;  %v2400_v11 = vld [vmem:[#allocation2 + $0x408] sm:$0xf] }
  0x88   : > { %1369 = vmatpush.bf16.msrb.mxu2 %v2305_v18  ;;  %v1140_v18 = vunpack.c.l.b16 %v1105_v3  ;;  %v2477_v39 = vor.u32 %v2670_v29, %v2474_v30  ;;  %v2658_v3 = vld [vmem:[#allocation2 + $0x444] sm:$0xf]  ;;  %v2653_v29 = vld [vmem:[#allocation2 + $0x414] sm:$0xf0]  ;;  %v1418_v30 = vld [vmem:[%s2840_s27] sm:$0xc] }
  0x89   : > { %1388 = vmatpush.bf16.msrb.mxu3 %v2309_v19  ;;  %1350 = vmatpush.bf16.msrb.mxu1 %v2301_v31  ;;  %v2480_v19 = vld [vmem:[#allocation2 + $0x4a8] sm:$0xf]  ;;  %v1154_v31 = vsel %vm1142_vm2, %v1150_v16, %v2896_v17  ;;  %v2655_v16 = vld [vmem:[#allocation2 + $0x42c] sm:$0xf]  ;;  %v2401_v41 = vor.u32 %v2653_v29, %v2400_v11 }
  0x8a   : > { %v2900_v32 = vpack.c.b16 %v1140_v18, %v1140_v18  ;;  %v2481_v33 = vor.u32 %v2673_v21, %v2480_v19  ;;  %v2418_v18 = vld [vmem:[#allocation2 + $0x438] sm:$0xf0]  ;;  %v2408_v19 = vld [vmem:[#allocation2 + $0x420] sm:$0xf]  ;;  %v2656_v21 = vld [vmem:[#allocation2 + $0x42c] sm:$0xf0] }
  0x8b   : > { %1332 = vmatpush.bf16.msrb.mxu0 %v2281_v38  ;;  %v2448_v38 = vld [vmem:[#allocation2 + $0x468] sm:$0xf]  ;;  %v2421_v28 = vor.u32 %v2655_v16, %v2418_v18 }
  0x8c   : > { %1370 = vmatpush.bf16.msrb.mxu2 %v2289_v35  ;;  %v2464_v35 = vld [vmem:[#allocation2 + $0x488] sm:$0xf]  ;;  %v1156_v45 = vshrl.u32 %v2900_v32, 16  ;;  %v1159_v46 = vshll.u32 %v2900_v32, 16 }
  0x8d   : > { %1389 = vmatpush.bf16.msrb.mxu3 %v2293_v36  ;;  %1351 = vmatpush.bf16.msrb.mxu1 %v2285_v49  ;;  %v2669_v36 = vld [vmem:[#allocation2 + $0x494] sm:$0xf0] }
  0x8e   : > { %v2465_v47 = vor.u32 %v2669_v36, %v2464_v35  ;;  %v2665_v49 = vld [vmem:[#allocation2 + $0x474] sm:$0xf0]  ;;  %v1158_v58 = vrot.slane %v1156_v45, 1  ;;  %v1161_v59 = vrot.slane %v1159_v46, 2  ;;  %v2402_v35 = vld [vmem:[#allocation2 + $0x418] sm:$0xf0] }
  0x8f   : > { %1333 = vmatpush.bf16.msrb.mxu0 %v2265_v15  ;;  %v2424_v15 = vld [vmem:[#allocation2 + $0x440] sm:$0xf]  ;;  %v2724_v46 = vld [vmem:[%s2840_s27 + $0x8] sm:$0xff] }
  0x90   : > { %1371 = vmatpush.bf16.msrb.mxu2 %v2273_v54  ;;  %v2440_v54 = vld [vmem:[#allocation2 + $0x460] sm:$0xf] }
  0x91   : > { %1390 = vmatpush.bf16.msrb.mxu3 %v2277_v55  ;;  %1352 = vmatpush.bf16.msrb.mxu1 %v2269_v23  ;;  %v2664_v55 = vld [vmem:[#allocation2 + $0x46c] sm:$0xf0]  ;;  %v2392_v36 = vld [vmem:[#allocation2 + $0x400] sm:$0xf] }
  0x92   : > { %1334 = vmatmul.bf16.vlgmr.msrb.gmra.mxu0 %v1154_v31  ;;  %v2441_v0 = vor.u32 %v2664_v55, %v2440_v54  ;;  %v2660_v23 = vld [vmem:[#allocation2 + $0x44c] sm:$0xf0] }
  0x93   : > { %1623 = vmatpush.bf16.msra.mxu0 %v2505_v5  ;;  %1372 = vmatmul.bf16.vlgmr.msrb.gmra.mxu2 %v1154_v31  ;;  %v2426_v5 = vld [vmem:[#allocation2 + $0x450] sm:$0xf0]  ;;  %v2425_v12 = vor.u32 %v2660_v23, %v2424_v15 }
  0x94   : > { %1661 = vmatpush.bf16.msra.mxu2 %v2513_v60  ;;  %1353 = vmatmul.bf16.vlgmr.msrb.gmra.mxu1 %v1154_v31  ;;  %v2449_v60 = vor.u32 %v2665_v49, %v2448_v38  ;;  %v2429_v13 = vor.u32 %v2658_v3, %v2426_v5 }
  0x95   : > { %1680 = vmatpush.bf16.msra.mxu3 %v2517_v61  ;;  %1642 = vmatpush.bf16.msra.mxu1 %v2509_v6  ;;  %v2453_v61 = vor.u32 %v2663_v4, %v2450_v53  ;;  %v1162_v6 = vor.u32 %v1161_v59, %v1158_v58  ;;  %v1459_v4 = vrot.slane %v2900_v32, 2 }
  0x96   : > { %1391 = vmatmul.bf16.vlgmr.msrb.gmra.mxu3 %v1154_v31  ;;  %v2409_v31 = vor.u32 %v2656_v21, %v2408_v19 }
  0x97   : > { %1624 = vmatpush.bf16.msra.mxu0 %v2489_v22  ;;  %v2654_v22 = vld [vmem:[#allocation2 + $0x424] sm:$0xf]  ;;  %v1163_v26 = vsel %vm1142_vm2, %v2896_v17, %v1162_v6  ;;  %v1453_v17 = vunpack.c.l.b16 %v1418_v30 }
  0x98   : > { %1662 = vmatpush.bf16.msra.mxu2 %v2497_v8  ;;  %v2437_v8 = vor.u32 %v2659_v2, %v2434_v20 }
  0x99   : > { %1681 = vmatpush.bf16.msra.mxu3 %v2501_v9  ;;  %1643 = vmatpush.bf16.msra.mxu1 %v2493_v25  ;;  %v2416_v9 = vld [vmem:[#allocation2 + $0x428] sm:$0xf]  ;;  %v2410_v25 = vld [vmem:[#allocation2 + $0x430] sm:$0xf0]  ;;  %v1454_v44 = vpack.c.b16 %v2685_v50, %v1453_v17 }
  0x9a   : > { %v2417_v27 = vor.u32 %v2657_v10, %v2416_v9 }
  0x9b   : > { %1625 = vmatpush.bf16.msra.mxu0 %v2473_v37  ;;  %v2652_v37 = vld [vmem:[#allocation2 + $0x40c] sm:$0xf0]  ;;  %v1456_v45 = vrot.slane %v1454_v44, 2 }
  0x9c   : > { %1663 = vmatpush.bf16.msra.mxu2 %v2481_v33  ;;  %v2413_v33 = vor.u32 %v2654_v22, %v2410_v25  ;;  %v2393_v42 = vor.u32 %v2652_v37, %v2392_v36 }
  0x9d   : > { %1682 = vmatpush.bf16.msra.mxu3 %v2485_v34  ;;  %1644 = vmatpush.bf16.msra.mxu1 %v2477_v39  ;;  %v2651_v34 = vld [vmem:[#allocation2 + $0x40c] sm:$0xf]  ;;  %v2650_v39 = vld [vmem:[#allocation2 + $0x404] sm:$0xf] }
  0x9e   : > { %v2405_v24 = vor.u32 %v2651_v34, %v2402_v35  ;;  %v2397_v43 = vor.u32 %v2650_v39, %v2394_v40 }
  0x9f   : > { %1626 = vmatpush.bf16.msra.mxu0 %v2457_v51 }
  0xa0   : > { %1664 = vmatpush.bf16.msra.mxu2 %v2465_v47  ;;  %v1457_v47 = vrot.slane %v2724_v46, 2 }
  0xa1   : > { %1683 = vmatpush.bf16.msra.mxu3 %v2469_v48  ;;  %1645 = vmatpush.bf16.msra.mxu1 %v2461_v52 }
  0xa2   : > { %1339 = vmatmul.bf16.gmra.mxu0 %v1163_v26  ;;  %v1458_v49 = vsel %vm1455_vm3, %v1456_v45, %v1457_v47  ;;  %v1460_v57 = vsel %vm1455_vm3, %v1457_v47, %v1459_v4 }
  0xa3   : > { %1627 = vmatpush.bf16.msra.mxu0 %v2441_v0  ;;  %1377 = vmatmul.bf16.gmra.mxu2 %v1163_v26 }
  0xa4   : > { %1665 = vmatpush.bf16.msra.mxu2 %v2449_v60  ;;  %1358 = vmatmul.bf16.gmra.mxu1 %v1163_v26 }
  0xa5   : > { %1684 = vmatpush.bf16.msra.mxu3 %v2453_v61  ;;  %1646 = vmatpush.bf16.msra.mxu1 %v2445_v1 }
  0xa6   : > { %1396 = vmatmul.bf16.gmra.mxu3 %v1163_v26 }
  0xa7   : > { %1628 = vmatpush.bf16.msra.mxu0 %v2425_v12 }
  0xa8   : > { %1666 = vmatpush.bf16.msra.mxu2 %v2433_v7 }
  0xa9   : > { %1685 = vmatpush.bf16.msra.mxu3 %v2437_v8  ;;  %1647 = vmatpush.bf16.msra.mxu1 %v2429_v13 }
  0xab   : > { %1629 = vmatpush.bf16.msra.mxu0 %v2409_v31 }
  0xac   : > { %1667 = vmatpush.bf16.msra.mxu2 %v2417_v27 }
  0xad   : > { %1686 = vmatpush.bf16.msra.mxu3 %v2421_v28  ;;  %1648 = vmatpush.bf16.msra.mxu1 %v2413_v33 }
  0xaf   : > { %1630 = vmatpush.bf16.msra.mxu0 %v2393_v42  ;;  %v503_v48 = vpop.f32.mrf.mxu0  ;;  %v522_v38 = vpop.f32.mrf.mxu1 }
  0xb0   : > { %1668 = vmatpush.bf16.msra.mxu2 %v2401_v41 }
  0xb1   : > { %1687 = vmatpush.bf16.msra.mxu3 %v2405_v24  ;;  %1649 = vmatpush.bf16.msra.mxu1 %v2397_v43 }
  0xb2   : > { %1631 = vmatmul.bf16.vlgmr.msra.gmra.mxu0 %v1458_v49 }
  0xb3   : > { %1669 = vmatmul.bf16.vlgmr.msra.gmra.mxu2 %v1458_v49 }
  0xb4   : > { %1650 = vmatmul.bf16.vlgmr.msra.gmra.mxu1 %v1458_v49 }
  0xb6   : > { %1688 = vmatmul.bf16.vlgmr.msra.gmra.mxu3 %v1458_v49  ;;  %v541_v51 = vpop.f32.mrf.mxu2 }
  0xb7   : > { %v560_v52 = vpop.f32.mrf.mxu3  ;;  %v505_v14 = vpop.f32.mrf.mxu0 }
  0xb8   : > { %v524_v50 = vpop.f32.mrf.mxu1 }
  0xbe   : > { %v543_v53 = vpop.f32.mrf.mxu2 }
  0xbf   : > { %v562_v54 = vpop.f32.mrf.mxu3  ;;  %v508_v55 = vpop.f32.mrf.mxu0 }
  0xc0   : > { %v527_v56 = vpop.f32.mrf.mxu1 }
  0xc2   : > { %1636 = vmatmul.bf16.gmra.mxu0 %v1460_v57 }
  0xc3   : > { %1674 = vmatmul.bf16.gmra.mxu2 %v1460_v57 }
  0xc4   : > { %1655 = vmatmul.bf16.gmra.mxu1 %v1460_v57 }
  0xc6   : > { %1693 = vmatmul.bf16.gmra.mxu3 %v1460_v57  ;;  %v546_v58 = vpop.f32.mrf.mxu2 }
  0xc7   : > { %v565_v59 = vpop.f32.mrf.mxu3  ;;  %v510_v60 = vpop.f32.mrf.mxu0 }
  0xc8   : > { %v529_v61 = vpop.f32.mrf.mxu1 }
  0xce   : > { %v548_v62 = vpop.f32.mrf.mxu2 }
  0xcf   : > { %v567_v63 = vpop.f32.mrf.mxu3  ;;  %v741_v0 = vpop.f32.mrf.mxu0 }
  0xd0   : > { %v742_v1 = vadd.f32 %v741_v0, %v503_v48 }
  0xd1   : > { %v760_v2 = vpop.f32.mrf.mxu1 }
  0xd2   : > { %v761_v32 = vadd.f32 %v760_v2, %v522_v38 }
  0xd6   : > { %v779_v20 = vpop.f32.mrf.mxu2 }
  0xd7   : > { %v2913_v15 = vadd.f32 %v779_v20, %v541_v51  ;;  %v743_v5 = vpop.f32.mrf.mxu0 }
  0xd8   : > { %v2917_v6 = vadd.f32 %v743_v5, %v505_v14 }
  0xd9   : > { %v798_v23 = vpop.f32.mrf.mxu3  ;;  %v762_v7 = vpop.f32.mrf.mxu1 }
  0xda   : > { %v2915_v3 = vadd.f32 %v798_v23, %v560_v52  ;;  %v2919_v8 = vadd.f32 %v762_v7, %v524_v50 }
  0xde   : > { %v781_v9 = vpop.f32.mrf.mxu2 }
  0xdf   : > { %v2921_v10 = vadd.f32 %v781_v9, %v543_v53  ;;  %v746_v16 = vpop.f32.mrf.mxu0 }
  0xe0   : > { %v2925_v18 = vadd.f32 %v746_v16, %v508_v55 }
  0xe1   : > { %v800_v12 = vpop.f32.mrf.mxu3  ;;  %v765_v19 = vpop.f32.mrf.mxu1 }
  0xe2   : > { %v2923_v13 = vadd.f32 %v800_v12, %v562_v54  ;;  %v2927_v21 = vadd.f32 %v765_v19, %v527_v56 }
  0xe6   : > { %v784_v22 = vpop.f32.mrf.mxu2 }
  0xe7   : > { %v2929_v25 = vadd.f32 %v784_v22, %v546_v58  ;;  %v748_v28 = vpop.f32.mrf.mxu0 }
  0xe8   : > { %v2933_v11 = vadd.f32 %v748_v28, %v510_v60 }
  0xe9   : > { %v803_v26 = vpop.f32.mrf.mxu3  ;;  %v767_v29 = vpop.f32.mrf.mxu1 }
  0xea   : > { %v2931_v27 = vadd.f32 %v803_v26, %v565_v59  ;;  %v2935_v30 = vadd.f32 %v767_v29, %v529_v61 }
  0xee   : > { %v786_v31 = vpop.f32.mrf.mxu2 }
  0xef   : > { %v2937_v33 = vadd.f32 %v786_v31, %v548_v62  ;;  %v1022_v36 = vpop.f32.mrf.mxu0  ;;  %v227_v62 = vld [vmem:[%s3063_s2] sm:$0xf] }
  0xf0   : > { %v2977_v5 = vperm.slane %v227_v62, 0  ;;  %v2979_v12 = vperm.slane %v227_v62, 1 }
  0xf1   : > { %v805_v34 = vpop.f32.mrf.mxu3  ;;  %v1041_v37 = vpop.f32.mrf.mxu1 }
  0xf2   : > { %v2939_v35 = vadd.f32 %v805_v34, %v567_v63  ;;  %v1089_v63 = vadd.f32 %v1022_v36, %v742_v1  ;;  %v1090_v0 = vadd.f32 %v1041_v37, %v761_v32  ;;  %v2992_v34 = vperm.slane %v227_v62, 2 }
  0xf6   : > { %v1060_v39 = vpop.f32.mrf.mxu2 }
  0xf7   : > { %v1024_v17 = vpop.f32.mrf.mxu0  ;;  %v1091_v32 = vadd.f32 %v1060_v39, %v2913_v15 }
  0xf8   : > { %v1093_v29 = vadd.f32 %v1024_v17, %v2917_v6 }
  0xf9   : > { %v1079_v40 = vpop.f32.mrf.mxu3  ;;  %v1043_v41 = vpop.f32.mrf.mxu1 }
  0xfa   : > { %v1092_v26 = vadd.f32 %v1079_v40, %v2915_v3  ;;  %v1094_v36 = vadd.f32 %v1043_v41, %v2919_v8 }
  0xfe   : > { %v2941_v24 = vpop.f32.mrf.mxu2 }
  0xff   : > { %v2945_v43 = vpop.f32.mrf.mxu0 }
 0x101   : > { %v2943_v42 = vpop.f32.mrf.mxu3  ;;  %v2947_v44 = vpop.f32.mrf.mxu1 }
 0x106   : > { %v2949_v45 = vpop.f32.mrf.mxu2 }
 0x107   : > { %v2953_v47 = vpop.f32.mrf.mxu0 }
 0x109   : > { %v2951_v46 = vpop.f32.mrf.mxu3  ;;  %v2955_v48 = vpop.f32.mrf.mxu1 }
 0x10e   : > { %v2957_v38 = vpop.f32.mrf.mxu2 }
 0x10f   : > { %v1335_v51 = vpop.f32.mrf.mxu0 }
 0x110   : > { %v1402_v20 = vadd.f32 %v1335_v51, %v1089_v63 }
 0x111   : > { %v2959_v49 = vpop.f32.mrf.mxu3  ;;  %v1354_v52 = vpop.f32.mrf.mxu1 }
 0x112   : > { %v1403_v7 = vadd.f32 %v1354_v52, %v1090_v0  ;;  %v2996_v52 = vperm.slane %v227_v62, 3 }
 0x116   : > { %v1373_v14 = vpop.f32.mrf.mxu2 }
 0x117   : > { %v1337_v4 = vpop.f32.mrf.mxu0  ;;  %v1404_v31 = vadd.f32 %v1373_v14, %v1091_v32 }
 0x118   : > { %v1406_v15 = vadd.f32 %v1337_v4, %v1093_v29  ;;  %v1102_v29 = vadd.f32 %v2955_v48, %v2935_v30 }
 0x119   : > { %v1392_v50 = vpop.f32.mrf.mxu3  ;;  %v1356_v53 = vpop.f32.mrf.mxu1 }
 0x11a   : > { %v1405_v37 = vadd.f32 %v1392_v50, %v1092_v26  ;;  %v1407_v40 = vadd.f32 %v1356_v53, %v1094_v36  ;;  %v1095_v50 = vadd.f32 %v2941_v24, %v2921_v10  ;;  %v1096_v53 = vadd.f32 %v2943_v42, %v2923_v13 }
 0x11b   : > { %v1101_v26 = vadd.f32 %v2953_v47, %v2933_v11 }
 0x11e   : > { %v1375_v54 = vpop.f32.mrf.mxu2 }
 0x11f   : > { %v1340_v56 = vpop.f32.mrf.mxu0 }
 0x121   : > { %v1394_v55 = vpop.f32.mrf.mxu3  ;;  %v1359_v57 = vpop.f32.mrf.mxu1 }
 0x126   : > { %v2961_v58 = vpop.f32.mrf.mxu2 }
 0x127   : > { %v2965_v60 = vpop.f32.mrf.mxu0 }
 0x129   : > { %v2963_v59 = vpop.f32.mrf.mxu3  ;;  %v2967_v61 = vpop.f32.mrf.mxu1 }
 0x12a   : > { %v1415_v36 = vadd.f32 %v2967_v61, %v1102_v29  ;;  %v1104_v61 = vadd.f32 %v2959_v49, %v2939_v35 }
 0x12e   : > { %v2972_v2 = vpop.f32.mrf.mxu2 }
 0x12f   : > { %v1632_v9 = vpop.f32.mrf.mxu0 }
 0x130   : > { %v1699_v16 = vadd.f32 %v1632_v9, %v1402_v20  ;;  %v1097_v20 = vadd.f32 %v2945_v43, %v2925_v18  ;;  %v1098_v9 = vadd.f32 %v2947_v44, %v2927_v21  ;;  %v1099_v44 = vadd.f32 %v2949_v45, %v2929_v25 }
 0x131   : > { %v2975_v23 = vpop.f32.mrf.mxu3  ;;  %v1651_v19 = vpop.f32.mrf.mxu1 }
 0x132   : > { %v1700_v1 = vadd.f32 %v1651_v19, %v1403_v7  ;;  %v1724_v22 = vadd.f32 %v2977_v5, %v1699_v16  ;;  %v1408_v7 = vadd.f32 %v1375_v54, %v1095_v50  ;;  %v1409_v16 = vadd.f32 %v1394_v55, %v1096_v53 }
 0x133   : > { %v1410_v24 = vadd.f32 %v1340_v56, %v1097_v20  ;;  %v1411_v13 = vadd.f32 %v1359_v57, %v1098_v9  ;;  %v1100_v56 = vadd.f32 %v2951_v46, %v2931_v27  ;;  %v1414_v27 = vadd.f32 %v2965_v60, %v1101_v26 }
 0x134   : > { %v1725_v28 = vadd.f32 %v2979_v12, %v1700_v1  ;;  %1740 = vst [vmem:[%s2984_s6] sm:$0xff] %v1724_v22 }
 0x135   : > { %v1413_v25 = vadd.f32 %v2963_v59, %v1100_v56 }
 0x136   : > { %1741 = vst [vmem:[%s2984_s6 + $0x8] sm:$0xff] %v1725_v28  ;;  %v1670_v51 = vpop.f32.mrf.mxu2  ;;  %v1412_v28 = vadd.f32 %v2961_v58, %v1099_v44 }
 0x137   : > { %v1701_v39 = vadd.f32 %v1670_v51, %v1404_v31  ;;  %v1634_v6 = vpop.f32.mrf.mxu0  ;;  %v1103_v51 = vadd.f32 %v2957_v38, %v2937_v33 }
 0x138   : > { %v1703_v14 = vadd.f32 %v1634_v6, %v1406_v15 }
 0x139   : > { %v1689_v3 = vpop.f32.mrf.mxu3  ;;  %v1726_v17 = vadd.f32 %v2992_v34, %v1701_v39  ;;  %v1653_v0 = vpop.f32.mrf.mxu1  ;;  %v1416_v39 = vadd.f32 %v2972_v2, %v1103_v51 }
 0x13a   : > { %v1702_v63 = vadd.f32 %v1689_v3, %v1405_v37  ;;  %v1704_v41 = vadd.f32 %v1653_v0, %v1407_v40  ;;  %v1728_v4 = vadd.f32 %v2977_v5, %v1703_v14  ;;  %v1417_v3 = vadd.f32 %v2975_v23, %v1104_v61 }
 0x13b   : > { %1742 = vst [vmem:[%s2984_s6 + $0x10] sm:$0xff] %v1726_v17 }
 0x13c   : > { %v1727_v8 = vadd.f32 %v2996_v52, %v1702_v63  ;;  %v1729_v62 = vadd.f32 %v2979_v12, %v1704_v41  ;;  %1744 = vst [vmem:[%s2984_s6 + $0x20] sm:$0xff] %v1728_v4 }
 0x13e   : > { %1743 = vst [vmem:[%s2984_s6 + $0x18] sm:$0xff] %v1727_v8  ;;  %v1672_v10 = vpop.f32.mrf.mxu2 }
 0x13f   : > { %1745 = vst [vmem:[%s2984_s6 + $0x28] sm:$0xff] %v1729_v62  ;;  %v1705_v19 = vadd.f32 %v1672_v10, %v1408_v7  ;;  %v1637_v32 = vpop.f32.mrf.mxu0 }
 0x140   : > { %v1707_v18 = vadd.f32 %v1637_v32, %v1410_v24 }
 0x141   : > { %v1691_v1 = vpop.f32.mrf.mxu3  ;;  %v1730_v22 = vadd.f32 %v2992_v34, %v1705_v19  ;;  %v1656_v43 = vpop.f32.mrf.mxu1 }
 0x142   : > { %v1706_v42 = vadd.f32 %v1691_v1, %v1409_v16  ;;  %v1708_v21 = vadd.f32 %v1656_v43, %v1411_v13  ;;  %v1732_v55 = vadd.f32 %v2977_v5, %v1707_v18 }
 0x143   : > { %1746 = vst [vmem:[%s2984_s6 + $0x30] sm:$0xff] %v1730_v22 }
 0x144   : > { %v1731_v54 = vadd.f32 %v2996_v52, %v1706_v42  ;;  %v1733_v57 = vadd.f32 %v2979_v12, %v1708_v21  ;;  %1748 = vst [vmem:[%s2984_s6 + $0x40] sm:$0xff] %v1732_v55 }
 0x146   : > { %1747 = vst [vmem:[%s2984_s6 + $0x38] sm:$0xff] %v1731_v54  ;;  %v1675_v45 = vpop.f32.mrf.mxu2 }
 0x147   : > { %1749 = vst [vmem:[%s2984_s6 + $0x48] sm:$0xff] %v1733_v57  ;;  %v1709_v46 = vadd.f32 %v1675_v45, %v1412_v28  ;;  %v1639_v47 = vpop.f32.mrf.mxu0 }
 0x148   : > { %v1711_v37 = vadd.f32 %v1639_v47, %v1414_v27 }
 0x149   : > { %v1694_v31 = vpop.f32.mrf.mxu3  ;;  %v1734_v58 = vadd.f32 %v2992_v34, %v1709_v46  ;;  %v1658_v30 = vpop.f32.mrf.mxu1 }
 0x14a   : > { %v1710_v11 = vadd.f32 %v1694_v31, %v1413_v25  ;;  %v1712_v59 = vadd.f32 %v1658_v30, %v1415_v36  ;;  %v1736_v60 = vadd.f32 %v2977_v5, %v1711_v37 }
 0x14b   : > { %1750 = vst [vmem:[%s2984_s6 + $0x50] sm:$0xff] %v1734_v58 }
 0x14c   : > { %v1735_v48 = vadd.f32 %v2996_v52, %v1710_v11  ;;  %v1737_v15 = vadd.f32 %v2979_v12, %v1712_v59  ;;  %1752 = vst [vmem:[%s2984_s6 + $0x60] sm:$0xff] %v1736_v60 }
 0x14e   : > { %1751 = vst [vmem:[%s2984_s6 + $0x58] sm:$0xff] %v1735_v48  ;;  %v1677_v40 = vpop.f32.mrf.mxu2 }
 0x14f   : > { %1753 = vst [vmem:[%s2984_s6 + $0x68] sm:$0xff] %v1737_v15  ;;  %v1713_v63 = vadd.f32 %v1677_v40, %v1416_v39 }
 0x151   : > { %v1696_v33 = vpop.f32.mrf.mxu3  ;;  %v1738_v6 = vadd.f32 %v2992_v34, %v1713_v63 }
 0x152   : > { %v1714_v38 = vadd.f32 %v1696_v33, %v1417_v3 }
 0x153   : > { %1754 = vst [vmem:[%s2984_s6 + $0x70] sm:$0xff] %v1738_v6 }
 0x154   : > { %v1739_v5 = vadd.f32 %v2996_v52, %v1714_v38 }
 0x156   : > { %1755 = vst [vmem:[%s2984_s6 + $0x78] sm:$0xff] %v1739_v5 }
 0x157 PF: > { %s14_s14 = sadd.s32 1, %s2781_s14   ;;  %s3065_s12 = smov %s2777_s13 }
 0x158   : > { %p11_p8 = scmp.ge.s32.totalorder %s14_s14, 4   ;;  %s3066_s13 = smov %s3068_s16 }
 0x15a   :  { %13 = sbr.rel (!%p11_p8) target bundleno = 2 (0x2), region = 71 }
 0x15f   :  { %1788 = vsyncpa [#allocation3], 1 }
 0x160   :  { %1790 = vsyncpa [#allocation3 + $0x1], 1 }

</bundles_post_ra>
